<compile_context>
chip_gen: v7x
topology: tpu7x:2x2x1
jax: 0.10.0
libtpu: 0.0.40
codegen_flags: <defaults>
</compile_context>

<pallas_src>
import jax
import jax.numpy as jnp
from jax.experimental import pallas as pl
from jax.experimental.pallas import tpu as pltpu


def gru_kernel(h0_ref, gx_ref, whh_ref, bhhn_ref, wfc_ref, bfc_ref,
               out_ref, hT_ref, hs_ref):
    """Whole-sequence GRU + fc + tanh in a single kernel invocation.

    Shapes inside the kernel:
      h0_ref  : (B, H)        initial hidden state
      gx_ref  : (T, 3, B, H)  precomputed input-gate pre-activations
                              gx[t, g] = x_t * W_i{r,z,n}^T + b_i{r,z,n}
                              (+ b_h{r,z} folded in for the r and z gates)
      whh_ref : (3, H, H)     gate-major recurrent weights, whh[g] = W_h{r,z,n}^T
      bhhn_ref: (1, H)        b_hn (must stay inside r * (...), so not folded)
      wfc_ref : (1, H)        fc weight row
      bfc_ref : (1, 1)        fc bias (SMEM scalar)
      out_ref : (T, B)        tanh(fc(h_t))  -- time-major, wrapper transposes
      hT_ref  : (B, H)        final hidden state
      hs_ref  : (T, B, H)     VMEM scratch holding all hidden states
    """
    T = gx_ref.shape[0]

    # Loop-invariant operands, hoisted off the recurrence.
    w_r = whh_ref[0]
    w_z = whh_ref[1]
    w_n = whh_ref[2]
    b_hn = bhhn_ref[...]

    h = h0_ref[...]                                   # (B, H), lives in vregs

    # Trace-time-unrolled time loop (T is static from the shape); equivalent to
    # lax.fori_loop(0, T, step, h0, unroll=True). The hidden state stays in
    # vregs on the serial critical path; per-step work is 3 small MXU dots plus
    # VPU/EUP gate math and a single VMEM store of h_t.
    for t in range(T):
        gh_r = jnp.dot(h, w_r, preferred_element_type=jnp.float32)
        gh_z = jnp.dot(h, w_z, preferred_element_type=jnp.float32)
        gh_n = jnp.dot(h, w_n, preferred_element_type=jnp.float32)
        r = jax.nn.sigmoid(gx_ref[t, 0] + gh_r)
        z = jax.nn.sigmoid(gx_ref[t, 1] + gh_z)
        n = jnp.tanh(gx_ref[t, 2] + r * (gh_n + b_hn))
        h = (1.0 - z) * n + z * h
        hs_ref[t] = h

    hT_ref[...] = h

    # Output projection + tanh, batched over all timesteps at once.  fc has a
    # single output unit, so it is a lane reduction (no T tiny MXU round trips),
    # and the HBM store of the outputs happens once, as a full slab.
    y = jnp.sum(hs_ref[...] * wfc_ref[...], axis=-1)  # (T, B)
    out_ref[...] = jnp.tanh(y + bfc_ref[0, 0])


def gru_forward(x, params, h=None):
    """x: (B, T, 1) float32.  Returns (out (B, T, 1), h_n (1, B, H)), matching
    the PyTorch module: out = tanh(Linear(GRU(x, h))), h_n = final hidden state."""
    W_ih, W_hh, b_ih, b_hh, W_fc, b_fc = params
    B, T, _ = x.shape
    H = W_hh.shape[1]
    f32 = jnp.float32
    # TODO(synk): only num_layers=1 (the module's default) is implemented.

    # Gate-major parameter layout (PyTorch gate order: r, z, n).
    whh_gm = W_hh.reshape(3, H, H).transpose(0, 2, 1).astype(f32)   # (3,H,H): [g] = W_h?^T
    wih_gm = W_ih.reshape(3, H, 1).transpose(0, 2, 1).astype(f32)   # (3,1,H)
    b_ih_gm = b_ih.reshape(3, 1, H).astype(f32)
    b_hh_gm = b_hh.reshape(3, 1, H).astype(f32)
    # Fold the hidden biases of the r and z gates into the precomputed input term;
    # b_hn must stay inside r * (W_hn h + b_hn), so it is passed separately.
    bias_gm = b_ih_gm + b_hh_gm.at[2].set(0.0)                      # (3,1,H)
    bhh_n = b_hh[2 * H:3 * H].reshape(1, H).astype(f32)             # (1,H)
    wfc = W_fc.reshape(1, H).astype(f32)                            # (1,H)
    bfc = b_fc.reshape(1, 1).astype(f32)                            # (1,1) SMEM scalar

    h0 = jnp.zeros((B, H), f32) if h is None else h.reshape(B, H).astype(f32)

    # Hoist all h-independent work off the recurrence: input_size == 1, so the
    # input-gate pre-activations for every timestep are one broadcasted multiply.
    x_tm = jnp.transpose(x, (1, 0, 2)).astype(f32)                  # (T,B,1)
    gx_all = x_tm[:, None, :, :] * wih_gm[None] + bias_gm[None]     # (T,3,B,H)

    out_tb, h_final = pl.pallas_call(
        gru_kernel,
        grid=(1,),                                                  # single invocation
        in_specs=[
            pl.BlockSpec((B, H), lambda i: (0, 0)),                 # h0
            pl.BlockSpec((T, 3, B, H), lambda i: (0, 0, 0, 0)),     # gx (all timesteps)
            pl.BlockSpec((3, H, H), lambda i: (0, 0, 0)),           # W_hh^T (gate-major)
            pl.BlockSpec((1, H), lambda i: (0, 0)),                 # b_hn
            pl.BlockSpec((1, H), lambda i: (0, 0)),                 # W_fc
            pl.BlockSpec(memory_space=pltpu.MemorySpace.SMEM),      # b_fc scalar
        ],
        out_specs=[
            pl.BlockSpec((T, B), lambda i: (0, 0)),                 # out (time-major)
            pl.BlockSpec((B, H), lambda i: (0, 0)),                 # final hidden state
        ],
        out_shape=[
            jax.ShapeDtypeStruct((T, B), f32),
            jax.ShapeDtypeStruct((B, H), f32),
        ],
        scratch_shapes=[pltpu.VMEM((T, B, H), f32)],                # all h_t
        compiler_params=pltpu.CompilerParams(
            dimension_semantics=("arbitrary",)),
    )(h0, gx_all, whh_gm, bhh_n, wfc, bfc)

    out = jnp.transpose(out_tb, (1, 0))[:, :, None]                 # (B,T,1)
    return out, h_final[None]                                       # (1,B,H)


def gru_reference(x, params, h=None):
    """Pure-JAX reference matching torch.nn.GRU (+ fc + tanh) semantics."""
    W_ih, W_hh, b_ih, b_hh, W_fc, b_fc = params
    B, T, _ = x.shape
    H = W_hh.shape[1]
    h0 = jnp.zeros((B, H), jnp.float32) if h is None else h.reshape(B, H)

    def step(hp, xt):                                               # xt: (B, 1)
        gx = xt @ W_ih.T + b_ih
        gh = hp @ W_hh.T + b_hh
        r = jax.nn.sigmoid(gx[:, :H] + gh[:, :H])
        z = jax.nn.sigmoid(gx[:, H:2 * H] + gh[:, H:2 * H])
        n = jnp.tanh(gx[:, 2 * H:] + r * gh[:, 2 * H:])
        hn = (1.0 - z) * n + z * hp
        return hn, hn

    h_final, hs = jax.lax.scan(step, h0, jnp.transpose(x, (1, 0, 2)))
    hs = jnp.transpose(hs, (1, 0, 2))                               # (B, T, H)
    out = jnp.tanh(hs @ W_fc.T + b_fc)                              # (B, T, 1)
    return out, h_final[None]


def init_params(key, n_hidden, input_size=1):
    """Deterministic init matching PyTorch GRU/Linear shapes (uniform(-1/sqrt(H), 1/sqrt(H)))."""
    H = n_hidden
    k = 1.0 / jnp.sqrt(H)
    ks = jax.random.split(key, 6)
    W_ih = jax.random.uniform(ks[0], (3 * H, input_size), jnp.float32, -k, k)
    W_hh = jax.random.uniform(ks[1], (3 * H, H), jnp.float32, -k, k)
    b_ih = jax.random.uniform(ks[2], (3 * H,), jnp.float32, -k, k)
    b_hh = jax.random.uniform(ks[3], (3 * H,), jnp.float32, -k, k)
    W_fc = jax.random.uniform(ks[4], (1, H), jnp.float32, -k, k)
    b_fc = jax.random.uniform(ks[5], (1,), jnp.float32, -k, k)
    return (W_ih, W_hh, b_ih, b_hh, W_fc, b_fc)


if __name__ == "__main__":
    B, T, H = 2, 8, 32
    key = jax.random.PRNGKey(0)
    k_param, k_x, k_h = jax.random.split(key, 3)

    params = init_params(k_param, H)
    x = jax.random.normal(k_x, (B, T, 1), jnp.float32)

    # h = None path (default in the PyTorch forward)
    out, h_n = gru_forward(x, params, h=None)
    out, h_n = jax.block_until_ready((out, h_n))
    out_ref, h_n_ref = gru_reference(x, params, h=None)
    assert out.shape == (B, T, 1) and h_n.shape == (1, B, H)
    assert jnp.allclose(out, out_ref, atol=1e-5, rtol=1e-5)
    assert jnp.allclose(h_n, h_n_ref, atol=1e-5, rtol=1e-5)

    # explicit initial hidden state path
    h_init = 0.1 * jax.random.normal(k_h, (1, B, H), jnp.float32)
    out2, h_n2 = jax.block_until_ready(gru_forward(x, params, h=h_init))
    out2_ref, h_n2_ref = gru_reference(x, params, h=h_init)
    assert jnp.allclose(out2, out2_ref, atol=1e-5, rtol=1e-5)
    assert jnp.allclose(h_n2, h_n2_ref, atol=1e-5, rtol=1e-5)

    print("KERNEL_OK")
</pallas_src>

<mosaic_0001>
module attributes {stable_mosaic.version = 11 : i64} {
  func.func @gru_kernel(%arg0: i32, %arg1: memref<2x32xf32, #tpu.memory_space<vmem>>, %arg2: memref<8x3x2x32xf32, #tpu.memory_space<vmem>>, %arg3: memref<3x32x32xf32, #tpu.memory_space<vmem>>, %arg4: memref<1x32xf32, #tpu.memory_space<vmem>>, %arg5: memref<1x32xf32, #tpu.memory_space<vmem>>, %arg6: memref<1x1xf32, #tpu.memory_space<smem>>, %arg7: memref<8x2xf32, #tpu.memory_space<vmem>>, %arg8: memref<2x32xf32, #tpu.memory_space<vmem>>, %arg9: memref<8x2x32xf32, #tpu.memory_space<vmem>>) attributes {dimension_semantics = [#tpu.dimension_semantics<arbitrary>], iteration_bounds = array<i64: 1>, scalar_prefetch = 0 : i64, scratch_operands = 1 : i64, tpu.core_type = #tpu.core_type<tc>, window_params = [{pipeline_mode = #tpu.pipeline_mode<synchronous>, transform_indices = @transform_0, window_bounds = array<i64: 2, 32>}, {pipeline_mode = #tpu.pipeline_mode<synchronous>, transform_indices = @transform_1, window_bounds = array<i64: 8, 3, 2, 32>}, {pipeline_mode = #tpu.pipeline_mode<synchronous>, transform_indices = @transform_2, window_bounds = array<i64: 3, 32, 32>}, {pipeline_mode = #tpu.pipeline_mode<synchronous>, transform_indices = @transform_3, window_bounds = array<i64: 1, 32>}, {pipeline_mode = #tpu.pipeline_mode<synchronous>, transform_indices = @transform_4, window_bounds = array<i64: 1, 32>}, {transform_indices = @transform_5, window_bounds = array<i64: 1, 1>}, {pipeline_mode = #tpu.pipeline_mode<synchronous>, transform_indices = @transform_6, window_bounds = array<i64: 8, 2>}, {pipeline_mode = #tpu.pipeline_mode<synchronous>, transform_indices = @transform_7, window_bounds = array<i64: 2, 32>}]} {
    %c0 = arith.constant 0 : index
    %c0_0 = arith.constant 0 : index
    %c0_1 = arith.constant 0 : index
    %0 = vector.load %arg3[%c0, %c0_0, %c0_1] : memref<3x32x32xf32, #tpu.memory_space<vmem>>, vector<1x32x32xf32>
    %1 = vector.shape_cast %0 : vector<1x32x32xf32> to vector<32x32xf32>
    %c1 = arith.constant 1 : index
    %c0_2 = arith.constant 0 : index
    %c0_3 = arith.constant 0 : index
    %2 = vector.load %arg3[%c1, %c0_2, %c0_3] : memref<3x32x32xf32, #tpu.memory_space<vmem>>, vector<1x32x32xf32>
    %3 = vector.shape_cast %2 : vector<1x32x32xf32> to vector<32x32xf32>
    %c2 = arith.constant 2 : index
    %c0_4 = arith.constant 0 : index
    %c0_5 = arith.constant 0 : index
    %4 = vector.load %arg3[%c2, %c0_4, %c0_5] : memref<3x32x32xf32, #tpu.memory_space<vmem>>, vector<1x32x32xf32>
    %5 = vector.shape_cast %4 : vector<1x32x32xf32> to vector<32x32xf32>
    %c0_6 = arith.constant 0 : index
    %c0_7 = arith.constant 0 : index
    %6 = vector.load %arg4[%c0_6, %c0_7] : memref<1x32xf32, #tpu.memory_space<vmem>>, vector<1x32xf32>
    %c0_8 = arith.constant 0 : index
    %c0_9 = arith.constant 0 : index
    %7 = vector.load %arg1[%c0_8, %c0_9] : memref<2x32xf32, #tpu.memory_space<vmem>>, vector<2x32xf32>
    %cst = arith.constant dense<0.000000e+00> : vector<2x32xf32>
    %8 = tpu.matmul %7, %1, %cst {dimension_numbers = #tpu.dot_dimension_numbers<[1], [0], [0], [1], [0, 0, 1, 1], [], []>} : vector<2x32xf32>, vector<32x32xf32>, vector<2x32xf32> -> vector<2x32xf32>
    %cst_10 = arith.constant dense<0.000000e+00> : vector<2x32xf32>
    %9 = tpu.matmul %7, %3, %cst_10 {dimension_numbers = #tpu.dot_dimension_numbers<[1], [0], [0], [1], [0, 0, 1, 1], [], []>} : vector<2x32xf32>, vector<32x32xf32>, vector<2x32xf32> -> vector<2x32xf32>
    %cst_11 = arith.constant dense<0.000000e+00> : vector<2x32xf32>
    %10 = tpu.matmul %7, %5, %cst_11 {dimension_numbers = #tpu.dot_dimension_numbers<[1], [0], [0], [1], [0, 0, 1, 1], [], []>} : vector<2x32xf32>, vector<32x32xf32>, vector<2x32xf32> -> vector<2x32xf32>
    %c0_12 = arith.constant 0 : index
    %c0_13 = arith.constant 0 : index
    %c0_14 = arith.constant 0 : index
    %c0_15 = arith.constant 0 : index
    %11 = vector.load %arg2[%c0_12, %c0_13, %c0_14, %c0_15] : memref<8x3x2x32xf32, #tpu.memory_space<vmem>>, vector<1x1x2x32xf32>
    %12 = vector.shape_cast %11 : vector<1x1x2x32xf32> to vector<2x32xf32>
    %13 = arith.addf %12, %8 : vector<2x32xf32>
    %14 = arith.negf %13 : vector<2x32xf32>
    %15 = math.exp %14 : vector<2x32xf32>
    %cst_16 = arith.constant 1.000000e+00 : f32
    %16 = vector.broadcast %cst_16 : f32 to vector<2x32xf32>
    %17 = arith.addf %16, %15 : vector<2x32xf32>
    %18 = arith.divf %16, %17 : vector<2x32xf32>
    %c0_17 = arith.constant 0 : index
    %c1_18 = arith.constant 1 : index
    %c0_19 = arith.constant 0 : index
    %c0_20 = arith.constant 0 : index
    %19 = vector.load %arg2[%c0_17, %c1_18, %c0_19, %c0_20] : memref<8x3x2x32xf32, #tpu.memory_space<vmem>>, vector<1x1x2x32xf32>
    %20 = vector.shape_cast %19 : vector<1x1x2x32xf32> to vector<2x32xf32>
    %21 = arith.addf %20, %9 : vector<2x32xf32>
    %22 = arith.negf %21 : vector<2x32xf32>
    %23 = math.exp %22 : vector<2x32xf32>
    %cst_21 = arith.constant 1.000000e+00 : f32
    %24 = vector.broadcast %cst_21 : f32 to vector<2x32xf32>
    %25 = arith.addf %24, %23 : vector<2x32xf32>
    %26 = arith.divf %24, %25 : vector<2x32xf32>
    %c0_22 = arith.constant 0 : index
    %c2_23 = arith.constant 2 : index
    %c0_24 = arith.constant 0 : index
    %c0_25 = arith.constant 0 : index
    %27 = vector.load %arg2[%c0_22, %c2_23, %c0_24, %c0_25] : memref<8x3x2x32xf32, #tpu.memory_space<vmem>>, vector<1x1x2x32xf32>
    %28 = vector.shape_cast %27 : vector<1x1x2x32xf32> to vector<2x32xf32>
    %29 = vector.broadcast %6 : vector<1x32xf32> to vector<2x32xf32>
    %30 = arith.addf %10, %29 : vector<2x32xf32>
    %31 = arith.mulf %18, %30 : vector<2x32xf32>
    %32 = arith.addf %28, %31 : vector<2x32xf32>
    %33 = math.tanh %32 : vector<2x32xf32>
    %cst_26 = arith.constant 1.000000e+00 : f32
    %34 = vector.broadcast %cst_26 : f32 to vector<2x32xf32>
    %35 = arith.subf %34, %26 : vector<2x32xf32>
    %36 = arith.mulf %35, %33 : vector<2x32xf32>
    %37 = arith.mulf %26, %7 : vector<2x32xf32>
    %38 = arith.addf %36, %37 : vector<2x32xf32>
    %c0_27 = arith.constant 0 : index
    %c0_28 = arith.constant 0 : index
    %c0_29 = arith.constant 0 : index
    %39 = vector.load %arg9[%c0_27, %c0_28, %c0_29] : memref<8x2x32xf32, #tpu.memory_space<vmem>>, vector<1x2x32xf32>
    %40 = vector.shape_cast %39 : vector<1x2x32xf32> to vector<2x32xf32>
    %41 = vector.shape_cast %38 : vector<2x32xf32> to vector<1x2x32xf32>
    tpu.vector_store %arg9[%c0_27, %c0_28, %c0_29], %41 {strides = array<i32>} : memref<8x2x32xf32, #tpu.memory_space<vmem>>, vector<1x2x32xf32>,
    %cst_30 = arith.constant dense<0.000000e+00> : vector<2x32xf32>
    %42 = tpu.matmul %38, %1, %cst_30 {dimension_numbers = #tpu.dot_dimension_numbers<[1], [0], [0], [1], [0, 0, 1, 1], [], []>} : vector<2x32xf32>, vector<32x32xf32>, vector<2x32xf32> -> vector<2x32xf32>
    %cst_31 = arith.constant dense<0.000000e+00> : vector<2x32xf32>
    %43 = tpu.matmul %38, %3, %cst_31 {dimension_numbers = #tpu.dot_dimension_numbers<[1], [0], [0], [1], [0, 0, 1, 1], [], []>} : vector<2x32xf32>, vector<32x32xf32>, vector<2x32xf32> -> vector<2x32xf32>
    %cst_32 = arith.constant dense<0.000000e+00> : vector<2x32xf32>
    %44 = tpu.matmul %38, %5, %cst_32 {dimension_numbers = #tpu.dot_dimension_numbers<[1], [0], [0], [1], [0, 0, 1, 1], [], []>} : vector<2x32xf32>, vector<32x32xf32>, vector<2x32xf32> -> vector<2x32xf32>
    %c1_33 = arith.constant 1 : index
    %c0_34 = arith.constant 0 : index
    %c0_35 = arith.constant 0 : index
    %c0_36 = arith.constant 0 : index
    %45 = vector.load %arg2[%c1_33, %c0_34, %c0_35, %c0_36] : memref<8x3x2x32xf32, #tpu.memory_space<vmem>>, vector<1x1x2x32xf32>
    %46 = vector.shape_cast %45 : vector<1x1x2x32xf32> to vector<2x32xf32>
    %47 = arith.addf %46, %42 : vector<2x32xf32>
    %48 = arith.negf %47 : vector<2x32xf32>
    %49 = math.exp %48 : vector<2x32xf32>
    %cst_37 = arith.constant 1.000000e+00 : f32
    %50 = vector.broadcast %cst_37 : f32 to vector<2x32xf32>
    %51 = arith.addf %50, %49 : vector<2x32xf32>
    %52 = arith.divf %50, %51 : vector<2x32xf32>
    %c1_38 = arith.constant 1 : index
    %c1_39 = arith.constant 1 : index
    %c0_40 = arith.constant 0 : index
    %c0_41 = arith.constant 0 : index
    %53 = vector.load %arg2[%c1_38, %c1_39, %c0_40, %c0_41] : memref<8x3x2x32xf32, #tpu.memory_space<vmem>>, vector<1x1x2x32xf32>
    %54 = vector.shape_cast %53 : vector<1x1x2x32xf32> to vector<2x32xf32>
    %55 = arith.addf %54, %43 : vector<2x32xf32>
    %56 = arith.negf %55 : vector<2x32xf32>
    %57 = math.exp %56 : vector<2x32xf32>
    %cst_42 = arith.constant 1.000000e+00 : f32
    %58 = vector.broadcast %cst_42 : f32 to vector<2x32xf32>
    %59 = arith.addf %58, %57 : vector<2x32xf32>
    %60 = arith.divf %58, %59 : vector<2x32xf32>
    %c1_43 = arith.constant 1 : index
    %c2_44 = arith.constant 2 : index
    %c0_45 = arith.constant 0 : index
    %c0_46 = arith.constant 0 : index
    %61 = vector.load %arg2[%c1_43, %c2_44, %c0_45, %c0_46] : memref<8x3x2x32xf32, #tpu.memory_space<vmem>>, vector<1x1x2x32xf32>
    %62 = vector.shape_cast %61 : vector<1x1x2x32xf32> to vector<2x32xf32>
    %63 = vector.broadcast %6 : vector<1x32xf32> to vector<2x32xf32>
    %64 = arith.addf %44, %63 : vector<2x32xf32>
    %65 = arith.mulf %52, %64 : vector<2x32xf32>
    %66 = arith.addf %62, %65 : vector<2x32xf32>
    %67 = math.tanh %66 : vector<2x32xf32>
    %cst_47 = arith.constant 1.000000e+00 : f32
    %68 = vector.broadcast %cst_47 : f32 to vector<2x32xf32>
    %69 = arith.subf %68, %60 : vector<2x32xf32>
    %70 = arith.mulf %69, %67 : vector<2x32xf32>
    %71 = arith.mulf %60, %38 : vector<2x32xf32>
    %72 = arith.addf %70, %71 : vector<2x32xf32>
    %c1_48 = arith.constant 1 : index
    %c0_49 = arith.constant 0 : index
    %c0_50 = arith.constant 0 : index
    %73 = vector.load %arg9[%c1_48, %c0_49, %c0_50] : memref<8x2x32xf32, #tpu.memory_space<vmem>>, vector<1x2x32xf32>
    %74 = vector.shape_cast %73 : vector<1x2x32xf32> to vector<2x32xf32>
    %75 = vector.shape_cast %72 : vector<2x32xf32> to vector<1x2x32xf32>
    tpu.vector_store %arg9[%c1_48, %c0_49, %c0_50], %75 {strides = array<i32>} : memref<8x2x32xf32, #tpu.memory_space<vmem>>, vector<1x2x32xf32>,
    %cst_51 = arith.constant dense<0.000000e+00> : vector<2x32xf32>
    %76 = tpu.matmul %72, %1, %cst_51 {dimension_numbers = #tpu.dot_dimension_numbers<[1], [0], [0], [1], [0, 0, 1, 1], [], []>} : vector<2x32xf32>, vector<32x32xf32>, vector<2x32xf32> -> vector<2x32xf32>
    %cst_52 = arith.constant dense<0.000000e+00> : vector<2x32xf32>
    %77 = tpu.matmul %72, %3, %cst_52 {dimension_numbers = #tpu.dot_dimension_numbers<[1], [0], [0], [1], [0, 0, 1, 1], [], []>} : vector<2x32xf32>, vector<32x32xf32>, vector<2x32xf32> -> vector<2x32xf32>
    %cst_53 = arith.constant dense<0.000000e+00> : vector<2x32xf32>
    %78 = tpu.matmul %72, %5, %cst_53 {dimension_numbers = #tpu.dot_dimension_numbers<[1], [0], [0], [1], [0, 0, 1, 1], [], []>} : vector<2x32xf32>, vector<32x32xf32>, vector<2x32xf32> -> vector<2x32xf32>
    %c2_54 = arith.constant 2 : index
    %c0_55 = arith.constant 0 : index
    %c0_56 = arith.constant 0 : index
    %c0_57 = arith.constant 0 : index
    %79 = vector.load %arg2[%c2_54, %c0_55, %c0_56, %c0_57] : memref<8x3x2x32xf32, #tpu.memory_space<vmem>>, vector<1x1x2x32xf32>
    %80 = vector.shape_cast %79 : vector<1x1x2x32xf32> to vector<2x32xf32>
    %81 = arith.addf %80, %76 : vector<2x32xf32>
    %82 = arith.negf %81 : vector<2x32xf32>
    %83 = math.exp %82 : vector<2x32xf32>
    %cst_58 = arith.constant 1.000000e+00 : f32
    %84 = vector.broadcast %cst_58 : f32 to vector<2x32xf32>
    %85 = arith.addf %84, %83 : vector<2x32xf32>
    %86 = arith.divf %84, %85 : vector<2x32xf32>
    %c2_59 = arith.constant 2 : index
    %c1_60 = arith.constant 1 : index
    %c0_61 = arith.constant 0 : index
    %c0_62 = arith.constant 0 : index
    %87 = vector.load %arg2[%c2_59, %c1_60, %c0_61, %c0_62] : memref<8x3x2x32xf32, #tpu.memory_space<vmem>>, vector<1x1x2x32xf32>
    %88 = vector.shape_cast %87 : vector<1x1x2x32xf32> to vector<2x32xf32>
    %89 = arith.addf %88, %77 : vector<2x32xf32>
    %90 = arith.negf %89 : vector<2x32xf32>
    %91 = math.exp %90 : vector<2x32xf32>
    %cst_63 = arith.constant 1.000000e+00 : f32
    %92 = vector.broadcast %cst_63 : f32 to vector<2x32xf32>
    %93 = arith.addf %92, %91 : vector<2x32xf32>
    %94 = arith.divf %92, %93 : vector<2x32xf32>
    %c2_64 = arith.constant 2 : index
    %c2_65 = arith.constant 2 : index
    %c0_66 = arith.constant 0 : index
    %c0_67 = arith.constant 0 : index
    %95 = vector.load %arg2[%c2_64, %c2_65, %c0_66, %c0_67] : memref<8x3x2x32xf32, #tpu.memory_space<vmem>>, vector<1x1x2x32xf32>
    %96 = vector.shape_cast %95 : vector<1x1x2x32xf32> to vector<2x32xf32>
    %97 = vector.broadcast %6 : vector<1x32xf32> to vector<2x32xf32>
    %98 = arith.addf %78, %97 : vector<2x32xf32>
    %99 = arith.mulf %86, %98 : vector<2x32xf32>
    %100 = arith.addf %96, %99 : vector<2x32xf32>
    %101 = math.tanh %100 : vector<2x32xf32>
    %cst_68 = arith.constant 1.000000e+00 : f32
    %102 = vector.broadcast %cst_68 : f32 to vector<2x32xf32>
    %103 = arith.subf %102, %94 : vector<2x32xf32>
    %104 = arith.mulf %103, %101 : vector<2x32xf32>
    %105 = arith.mulf %94, %72 : vector<2x32xf32>
    %106 = arith.addf %104, %105 : vector<2x32xf32>
    %c2_69 = arith.constant 2 : index
    %c0_70 = arith.constant 0 : index
    %c0_71 = arith.constant 0 : index
    %107 = vector.load %arg9[%c2_69, %c0_70, %c0_71] : memref<8x2x32xf32, #tpu.memory_space<vmem>>, vector<1x2x32xf32>
    %108 = vector.shape_cast %107 : vector<1x2x32xf32> to vector<2x32xf32>
    %109 = vector.shape_cast %106 : vector<2x32xf32> to vector<1x2x32xf32>
    tpu.vector_store %arg9[%c2_69, %c0_70, %c0_71], %109 {strides = array<i32>} : memref<8x2x32xf32, #tpu.memory_space<vmem>>, vector<1x2x32xf32>,
    %cst_72 = arith.constant dense<0.000000e+00> : vector<2x32xf32>
    %110 = tpu.matmul %106, %1, %cst_72 {dimension_numbers = #tpu.dot_dimension_numbers<[1], [0], [0], [1], [0, 0, 1, 1], [], []>} : vector<2x32xf32>, vector<32x32xf32>, vector<2x32xf32> -> vector<2x32xf32>
    %cst_73 = arith.constant dense<0.000000e+00> : vector<2x32xf32>
    %111 = tpu.matmul %106, %3, %cst_73 {dimension_numbers = #tpu.dot_dimension_numbers<[1], [0], [0], [1], [0, 0, 1, 1], [], []>} : vector<2x32xf32>, vector<32x32xf32>, vector<2x32xf32> -> vector<2x32xf32>
    %cst_74 = arith.constant dense<0.000000e+00> : vector<2x32xf32>
    %112 = tpu.matmul %106, %5, %cst_74 {dimension_numbers = #tpu.dot_dimension_numbers<[1], [0], [0], [1], [0, 0, 1, 1], [], []>} : vector<2x32xf32>, vector<32x32xf32>, vector<2x32xf32> -> vector<2x32xf32>
    %c3 = arith.constant 3 : index
    %c0_75 = arith.constant 0 : index
    %c0_76 = arith.constant 0 : index
    %c0_77 = arith.constant 0 : index
    %113 = vector.load %arg2[%c3, %c0_75, %c0_76, %c0_77] : memref<8x3x2x32xf32, #tpu.memory_space<vmem>>, vector<1x1x2x32xf32>
    %114 = vector.shape_cast %113 : vector<1x1x2x32xf32> to vector<2x32xf32>
    %115 = arith.addf %114, %110 : vector<2x32xf32>
    %116 = arith.negf %115 : vector<2x32xf32>
    %117 = math.exp %116 : vector<2x32xf32>
    %cst_78 = arith.constant 1.000000e+00 : f32
    %118 = vector.broadcast %cst_78 : f32 to vector<2x32xf32>
    %119 = arith.addf %118, %117 : vector<2x32xf32>
    %120 = arith.divf %118, %119 : vector<2x32xf32>
    %c3_79 = arith.constant 3 : index
    %c1_80 = arith.constant 1 : index
    %c0_81 = arith.constant 0 : index
    %c0_82 = arith.constant 0 : index
    %121 = vector.load %arg2[%c3_79, %c1_80, %c0_81, %c0_82] : memref<8x3x2x32xf32, #tpu.memory_space<vmem>>, vector<1x1x2x32xf32>
    %122 = vector.shape_cast %121 : vector<1x1x2x32xf32> to vector<2x32xf32>
    %123 = arith.addf %122, %111 : vector<2x32xf32>
    %124 = arith.negf %123 : vector<2x32xf32>
    %125 = math.exp %124 : vector<2x32xf32>
    %cst_83 = arith.constant 1.000000e+00 : f32
    %126 = vector.broadcast %cst_83 : f32 to vector<2x32xf32>
    %127 = arith.addf %126, %125 : vector<2x32xf32>
    %128 = arith.divf %126, %127 : vector<2x32xf32>
    %c3_84 = arith.constant 3 : index
    %c2_85 = arith.constant 2 : index
    %c0_86 = arith.constant 0 : index
    %c0_87 = arith.constant 0 : index
    %129 = vector.load %arg2[%c3_84, %c2_85, %c0_86, %c0_87] : memref<8x3x2x32xf32, #tpu.memory_space<vmem>>, vector<1x1x2x32xf32>
    %130 = vector.shape_cast %129 : vector<1x1x2x32xf32> to vector<2x32xf32>
    %131 = vector.broadcast %6 : vector<1x32xf32> to vector<2x32xf32>
    %132 = arith.addf %112, %131 : vector<2x32xf32>
    %133 = arith.mulf %120, %132 : vector<2x32xf32>
    %134 = arith.addf %130, %133 : vector<2x32xf32>
    %135 = math.tanh %134 : vector<2x32xf32>
    %cst_88 = arith.constant 1.000000e+00 : f32
    %136 = vector.broadcast %cst_88 : f32 to vector<2x32xf32>
    %137 = arith.subf %136, %128 : vector<2x32xf32>
    %138 = arith.mulf %137, %135 : vector<2x32xf32>
    %139 = arith.mulf %128, %106 : vector<2x32xf32>
    %140 = arith.addf %138, %139 : vector<2x32xf32>
    %c3_89 = arith.constant 3 : index
    %c0_90 = arith.constant 0 : index
    %c0_91 = arith.constant 0 : index
    %141 = vector.load %arg9[%c3_89, %c0_90, %c0_91] : memref<8x2x32xf32, #tpu.memory_space<vmem>>, vector<1x2x32xf32>
    %142 = vector.shape_cast %141 : vector<1x2x32xf32> to vector<2x32xf32>
    %143 = vector.shape_cast %140 : vector<2x32xf32> to vector<1x2x32xf32>
    tpu.vector_store %arg9[%c3_89, %c0_90, %c0_91], %143 {strides = array<i32>} : memref<8x2x32xf32, #tpu.memory_space<vmem>>, vector<1x2x32xf32>,
    %cst_92 = arith.constant dense<0.000000e+00> : vector<2x32xf32>
    %144 = tpu.matmul %140, %1, %cst_92 {dimension_numbers = #tpu.dot_dimension_numbers<[1], [0], [0], [1], [0, 0, 1, 1], [], []>} : vector<2x32xf32>, vector<32x32xf32>, vector<2x32xf32> -> vector<2x32xf32>
    %cst_93 = arith.constant dense<0.000000e+00> : vector<2x32xf32>
    %145 = tpu.matmul %140, %3, %cst_93 {dimension_numbers = #tpu.dot_dimension_numbers<[1], [0], [0], [1], [0, 0, 1, 1], [], []>} : vector<2x32xf32>, vector<32x32xf32>, vector<2x32xf32> -> vector<2x32xf32>
    %cst_94 = arith.constant dense<0.000000e+00> : vector<2x32xf32>
    %146 = tpu.matmul %140, %5, %cst_94 {dimension_numbers = #tpu.dot_dimension_numbers<[1], [0], [0], [1], [0, 0, 1, 1], [], []>} : vector<2x32xf32>, vector<32x32xf32>, vector<2x32xf32> -> vector<2x32xf32>
    %c4 = arith.constant 4 : index
    %c0_95 = arith.constant 0 : index
    %c0_96 = arith.constant 0 : index
    %c0_97 = arith.constant 0 : index
    %147 = vector.load %arg2[%c4, %c0_95, %c0_96, %c0_97] : memref<8x3x2x32xf32, #tpu.memory_space<vmem>>, vector<1x1x2x32xf32>
    %148 = vector.shape_cast %147 : vector<1x1x2x32xf32> to vector<2x32xf32>
    %149 = arith.addf %148, %144 : vector<2x32xf32>
    %150 = arith.negf %149 : vector<2x32xf32>
    %151 = math.exp %150 : vector<2x32xf32>
    %cst_98 = arith.constant 1.000000e+00 : f32
    %152 = vector.broadcast %cst_98 : f32 to vector<2x32xf32>
    %153 = arith.addf %152, %151 : vector<2x32xf32>
    %154 = arith.divf %152, %153 : vector<2x32xf32>
    %c4_99 = arith.constant 4 : index
    %c1_100 = arith.constant 1 : index
    %c0_101 = arith.constant 0 : index
    %c0_102 = arith.constant 0 : index
    %155 = vector.load %arg2[%c4_99, %c1_100, %c0_101, %c0_102] : memref<8x3x2x32xf32, #tpu.memory_space<vmem>>, vector<1x1x2x32xf32>
    %156 = vector.shape_cast %155 : vector<1x1x2x32xf32> to vector<2x32xf32>
    %157 = arith.addf %156, %145 : vector<2x32xf32>
    %158 = arith.negf %157 : vector<2x32xf32>
    %159 = math.exp %158 : vector<2x32xf32>
    %cst_103 = arith.constant 1.000000e+00 : f32
    %160 = vector.broadcast %cst_103 : f32 to vector<2x32xf32>
    %161 = arith.addf %160, %159 : vector<2x32xf32>
    %162 = arith.divf %160, %161 : vector<2x32xf32>
    %c4_104 = arith.constant 4 : index
    %c2_105 = arith.constant 2 : index
    %c0_106 = arith.constant 0 : index
    %c0_107 = arith.constant 0 : index
    %163 = vector.load %arg2[%c4_104, %c2_105, %c0_106, %c0_107] : memref<8x3x2x32xf32, #tpu.memory_space<vmem>>, vector<1x1x2x32xf32>
    %164 = vector.shape_cast %163 : vector<1x1x2x32xf32> to vector<2x32xf32>
    %165 = vector.broadcast %6 : vector<1x32xf32> to vector<2x32xf32>
    %166 = arith.addf %146, %165 : vector<2x32xf32>
    %167 = arith.mulf %154, %166 : vector<2x32xf32>
    %168 = arith.addf %164, %167 : vector<2x32xf32>
    %169 = math.tanh %168 : vector<2x32xf32>
    %cst_108 = arith.constant 1.000000e+00 : f32
    %170 = vector.broadcast %cst_108 : f32 to vector<2x32xf32>
    %171 = arith.subf %170, %162 : vector<2x32xf32>
    %172 = arith.mulf %171, %169 : vector<2x32xf32>
    %173 = arith.mulf %162, %140 : vector<2x32xf32>
    %174 = arith.addf %172, %173 : vector<2x32xf32>
    %c4_109 = arith.constant 4 : index
    %c0_110 = arith.constant 0 : index
    %c0_111 = arith.constant 0 : index
    %175 = vector.load %arg9[%c4_109, %c0_110, %c0_111] : memref<8x2x32xf32, #tpu.memory_space<vmem>>, vector<1x2x32xf32>
    %176 = vector.shape_cast %175 : vector<1x2x32xf32> to vector<2x32xf32>
    %177 = vector.shape_cast %174 : vector<2x32xf32> to vector<1x2x32xf32>
    tpu.vector_store %arg9[%c4_109, %c0_110, %c0_111], %177 {strides = array<i32>} : memref<8x2x32xf32, #tpu.memory_space<vmem>>, vector<1x2x32xf32>,
    %cst_112 = arith.constant dense<0.000000e+00> : vector<2x32xf32>
    %178 = tpu.matmul %174, %1, %cst_112 {dimension_numbers = #tpu.dot_dimension_numbers<[1], [0], [0], [1], [0, 0, 1, 1], [], []>} : vector<2x32xf32>, vector<32x32xf32>, vector<2x32xf32> -> vector<2x32xf32>
    %cst_113 = arith.constant dense<0.000000e+00> : vector<2x32xf32>
    %179 = tpu.matmul %174, %3, %cst_113 {dimension_numbers = #tpu.dot_dimension_numbers<[1], [0], [0], [1], [0, 0, 1, 1], [], []>} : vector<2x32xf32>, vector<32x32xf32>, vector<2x32xf32> -> vector<2x32xf32>
    %cst_114 = arith.constant dense<0.000000e+00> : vector<2x32xf32>
    %180 = tpu.matmul %174, %5, %cst_114 {dimension_numbers = #tpu.dot_dimension_numbers<[1], [0], [0], [1], [0, 0, 1, 1], [], []>} : vector<2x32xf32>, vector<32x32xf32>, vector<2x32xf32> -> vector<2x32xf32>
    %c5 = arith.constant 5 : index
    %c0_115 = arith.constant 0 : index
    %c0_116 = arith.constant 0 : index
    %c0_117 = arith.constant 0 : index
    %181 = vector.load %arg2[%c5, %c0_115, %c0_116, %c0_117] : memref<8x3x2x32xf32, #tpu.memory_space<vmem>>, vector<1x1x2x32xf32>
    %182 = vector.shape_cast %181 : vector<1x1x2x32xf32> to vector<2x32xf32>
    %183 = arith.addf %182, %178 : vector<2x32xf32>
    %184 = arith.negf %183 : vector<2x32xf32>
    %185 = math.exp %184 : vector<2x32xf32>
    %cst_118 = arith.constant 1.000000e+00 : f32
    %186 = vector.broadcast %cst_118 : f32 to vector<2x32xf32>
    %187 = arith.addf %186, %185 : vector<2x32xf32>
    %188 = arith.divf %186, %187 : vector<2x32xf32>
    %c5_119 = arith.constant 5 : index
    %c1_120 = arith.constant 1 : index
    %c0_121 = arith.constant 0 : index
    %c0_122 = arith.constant 0 : index
    %189 = vector.load %arg2[%c5_119, %c1_120, %c0_121, %c0_122] : memref<8x3x2x32xf32, #tpu.memory_space<vmem>>, vector<1x1x2x32xf32>
    %190 = vector.shape_cast %189 : vector<1x1x2x32xf32> to vector<2x32xf32>
    %191 = arith.addf %190, %179 : vector<2x32xf32>
    %192 = arith.negf %191 : vector<2x32xf32>
    %193 = math.exp %192 : vector<2x32xf32>
    %cst_123 = arith.constant 1.000000e+00 : f32
    %194 = vector.broadcast %cst_123 : f32 to vector<2x32xf32>
    %195 = arith.addf %194, %193 : vector<2x32xf32>
    %196 = arith.divf %194, %195 : vector<2x32xf32>
    %c5_124 = arith.constant 5 : index
    %c2_125 = arith.constant 2 : index
    %c0_126 = arith.constant 0 : index
    %c0_127 = arith.constant 0 : index
    %197 = vector.load %arg2[%c5_124, %c2_125, %c0_126, %c0_127] : memref<8x3x2x32xf32, #tpu.memory_space<vmem>>, vector<1x1x2x32xf32>
    %198 = vector.shape_cast %197 : vector<1x1x2x32xf32> to vector<2x32xf32>
    %199 = vector.broadcast %6 : vector<1x32xf32> to vector<2x32xf32>
    %200 = arith.addf %180, %199 : vector<2x32xf32>
    %201 = arith.mulf %188, %200 : vector<2x32xf32>
    %202 = arith.addf %198, %201 : vector<2x32xf32>
    %203 = math.tanh %202 : vector<2x32xf32>
    %cst_128 = arith.constant 1.000000e+00 : f32
    %204 = vector.broadcast %cst_128 : f32 to vector<2x32xf32>
    %205 = arith.subf %204, %196 : vector<2x32xf32>
    %206 = arith.mulf %205, %203 : vector<2x32xf32>
    %207 = arith.mulf %196, %174 : vector<2x32xf32>
    %208 = arith.addf %206, %207 : vector<2x32xf32>
    %c5_129 = arith.constant 5 : index
    %c0_130 = arith.constant 0 : index
    %c0_131 = arith.constant 0 : index
    %209 = vector.load %arg9[%c5_129, %c0_130, %c0_131] : memref<8x2x32xf32, #tpu.memory_space<vmem>>, vector<1x2x32xf32>
    %210 = vector.shape_cast %209 : vector<1x2x32xf32> to vector<2x32xf32>
    %211 = vector.shape_cast %208 : vector<2x32xf32> to vector<1x2x32xf32>
    tpu.vector_store %arg9[%c5_129, %c0_130, %c0_131], %211 {strides = array<i32>} : memref<8x2x32xf32, #tpu.memory_space<vmem>>, vector<1x2x32xf32>,
    %cst_132 = arith.constant dense<0.000000e+00> : vector<2x32xf32>
    %212 = tpu.matmul %208, %1, %cst_132 {dimension_numbers = #tpu.dot_dimension_numbers<[1], [0], [0], [1], [0, 0, 1, 1], [], []>} : vector<2x32xf32>, vector<32x32xf32>, vector<2x32xf32> -> vector<2x32xf32>
    %cst_133 = arith.constant dense<0.000000e+00> : vector<2x32xf32>
    %213 = tpu.matmul %208, %3, %cst_133 {dimension_numbers = #tpu.dot_dimension_numbers<[1], [0], [0], [1], [0, 0, 1, 1], [], []>} : vector<2x32xf32>, vector<32x32xf32>, vector<2x32xf32> -> vector<2x32xf32>
    %cst_134 = arith.constant dense<0.000000e+00> : vector<2x32xf32>
    %214 = tpu.matmul %208, %5, %cst_134 {dimension_numbers = #tpu.dot_dimension_numbers<[1], [0], [0], [1], [0, 0, 1, 1], [], []>} : vector<2x32xf32>, vector<32x32xf32>, vector<2x32xf32> -> vector<2x32xf32>
    %c6 = arith.constant 6 : index
    %c0_135 = arith.constant 0 : index
    %c0_136 = arith.constant 0 : index
    %c0_137 = arith.constant 0 : index
    %215 = vector.load %arg2[%c6, %c0_135, %c0_136, %c0_137] : memref<8x3x2x32xf32, #tpu.memory_space<vmem>>, vector<1x1x2x32xf32>
    %216 = vector.shape_cast %215 : vector<1x1x2x32xf32> to vector<2x32xf32>
    %217 = arith.addf %216, %212 : vector<2x32xf32>
    %218 = arith.negf %217 : vector<2x32xf32>
    %219 = math.exp %218 : vector<2x32xf32>
    %cst_138 = arith.constant 1.000000e+00 : f32
    %220 = vector.broadcast %cst_138 : f32 to vector<2x32xf32>
    %221 = arith.addf %220, %219 : vector<2x32xf32>
    %222 = arith.divf %220, %221 : vector<2x32xf32>
    %c6_139 = arith.constant 6 : index
    %c1_140 = arith.constant 1 : index
    %c0_141 = arith.constant 0 : index
    %c0_142 = arith.constant 0 : index
    %223 = vector.load %arg2[%c6_139, %c1_140, %c0_141, %c0_142] : memref<8x3x2x32xf32, #tpu.memory_space<vmem>>, vector<1x1x2x32xf32>
    %224 = vector.shape_cast %223 : vector<1x1x2x32xf32> to vector<2x32xf32>
    %225 = arith.addf %224, %213 : vector<2x32xf32>
    %226 = arith.negf %225 : vector<2x32xf32>
    %227 = math.exp %226 : vector<2x32xf32>
    %cst_143 = arith.constant 1.000000e+00 : f32
    %228 = vector.broadcast %cst_143 : f32 to vector<2x32xf32>
    %229 = arith.addf %228, %227 : vector<2x32xf32>
    %230 = arith.divf %228, %229 : vector<2x32xf32>
    %c6_144 = arith.constant 6 : index
    %c2_145 = arith.constant 2 : index
    %c0_146 = arith.constant 0 : index
    %c0_147 = arith.constant 0 : index
    %231 = vector.load %arg2[%c6_144, %c2_145, %c0_146, %c0_147] : memref<8x3x2x32xf32, #tpu.memory_space<vmem>>, vector<1x1x2x32xf32>
    %232 = vector.shape_cast %231 : vector<1x1x2x32xf32> to vector<2x32xf32>
    %233 = vector.broadcast %6 : vector<1x32xf32> to vector<2x32xf32>
    %234 = arith.addf %214, %233 : vector<2x32xf32>
    %235 = arith.mulf %222, %234 : vector<2x32xf32>
    %236 = arith.addf %232, %235 : vector<2x32xf32>
    %237 = math.tanh %236 : vector<2x32xf32>
    %cst_148 = arith.constant 1.000000e+00 : f32
    %238 = vector.broadcast %cst_148 : f32 to vector<2x32xf32>
    %239 = arith.subf %238, %230 : vector<2x32xf32>
    %240 = arith.mulf %239, %237 : vector<2x32xf32>
    %241 = arith.mulf %230, %208 : vector<2x32xf32>
    %242 = arith.addf %240, %241 : vector<2x32xf32>
    %c6_149 = arith.constant 6 : index
    %c0_150 = arith.constant 0 : index
    %c0_151 = arith.constant 0 : index
    %243 = vector.load %arg9[%c6_149, %c0_150, %c0_151] : memref<8x2x32xf32, #tpu.memory_space<vmem>>, vector<1x2x32xf32>
    %244 = vector.shape_cast %243 : vector<1x2x32xf32> to vector<2x32xf32>
    %245 = vector.shape_cast %242 : vector<2x32xf32> to vector<1x2x32xf32>
    tpu.vector_store %arg9[%c6_149, %c0_150, %c0_151], %245 {strides = array<i32>} : memref<8x2x32xf32, #tpu.memory_space<vmem>>, vector<1x2x32xf32>,
    %cst_152 = arith.constant dense<0.000000e+00> : vector<2x32xf32>
    %246 = tpu.matmul %242, %1, %cst_152 {dimension_numbers = #tpu.dot_dimension_numbers<[1], [0], [0], [1], [0, 0, 1, 1], [], []>} : vector<2x32xf32>, vector<32x32xf32>, vector<2x32xf32> -> vector<2x32xf32>
    %cst_153 = arith.constant dense<0.000000e+00> : vector<2x32xf32>
    %247 = tpu.matmul %242, %3, %cst_153 {dimension_numbers = #tpu.dot_dimension_numbers<[1], [0], [0], [1], [0, 0, 1, 1], [], []>} : vector<2x32xf32>, vector<32x32xf32>, vector<2x32xf32> -> vector<2x32xf32>
    %cst_154 = arith.constant dense<0.000000e+00> : vector<2x32xf32>
    %248 = tpu.matmul %242, %5, %cst_154 {dimension_numbers = #tpu.dot_dimension_numbers<[1], [0], [0], [1], [0, 0, 1, 1], [], []>} : vector<2x32xf32>, vector<32x32xf32>, vector<2x32xf32> -> vector<2x32xf32>
    %c7 = arith.constant 7 : index
    %c0_155 = arith.constant 0 : index
    %c0_156 = arith.constant 0 : index
    %c0_157 = arith.constant 0 : index
    %249 = vector.load %arg2[%c7, %c0_155, %c0_156, %c0_157] : memref<8x3x2x32xf32, #tpu.memory_space<vmem>>, vector<1x1x2x32xf32>
    %250 = vector.shape_cast %249 : vector<1x1x2x32xf32> to vector<2x32xf32>
    %251 = arith.addf %250, %246 : vector<2x32xf32>
    %252 = arith.negf %251 : vector<2x32xf32>
    %253 = math.exp %252 : vector<2x32xf32>
    %cst_158 = arith.constant 1.000000e+00 : f32
    %254 = vector.broadcast %cst_158 : f32 to vector<2x32xf32>
    %255 = arith.addf %254, %253 : vector<2x32xf32>
    %256 = arith.divf %254, %255 : vector<2x32xf32>
    %c7_159 = arith.constant 7 : index
    %c1_160 = arith.constant 1 : index
    %c0_161 = arith.constant 0 : index
    %c0_162 = arith.constant 0 : index
    %257 = vector.load %arg2[%c7_159, %c1_160, %c0_161, %c0_162] : memref<8x3x2x32xf32, #tpu.memory_space<vmem>>, vector<1x1x2x32xf32>
    %258 = vector.shape_cast %257 : vector<1x1x2x32xf32> to vector<2x32xf32>
    %259 = arith.addf %258, %247 : vector<2x32xf32>
    %260 = arith.negf %259 : vector<2x32xf32>
    %261 = math.exp %260 : vector<2x32xf32>
    %cst_163 = arith.constant 1.000000e+00 : f32
    %262 = vector.broadcast %cst_163 : f32 to vector<2x32xf32>
    %263 = arith.addf %262, %261 : vector<2x32xf32>
    %264 = arith.divf %262, %263 : vector<2x32xf32>
    %c7_164 = arith.constant 7 : index
    %c2_165 = arith.constant 2 : index
    %c0_166 = arith.constant 0 : index
    %c0_167 = arith.constant 0 : index
    %265 = vector.load %arg2[%c7_164, %c2_165, %c0_166, %c0_167] : memref<8x3x2x32xf32, #tpu.memory_space<vmem>>, vector<1x1x2x32xf32>
    %266 = vector.shape_cast %265 : vector<1x1x2x32xf32> to vector<2x32xf32>
    %267 = vector.broadcast %6 : vector<1x32xf32> to vector<2x32xf32>
    %268 = arith.addf %248, %267 : vector<2x32xf32>
    %269 = arith.mulf %256, %268 : vector<2x32xf32>
    %270 = arith.addf %266, %269 : vector<2x32xf32>
    %271 = math.tanh %270 : vector<2x32xf32>
    %cst_168 = arith.constant 1.000000e+00 : f32
    %272 = vector.broadcast %cst_168 : f32 to vector<2x32xf32>
    %273 = arith.subf %272, %264 : vector<2x32xf32>
    %274 = arith.mulf %273, %271 : vector<2x32xf32>
    %275 = arith.mulf %264, %242 : vector<2x32xf32>
    %276 = arith.addf %274, %275 : vector<2x32xf32>
    %c7_169 = arith.constant 7 : index
    %c0_170 = arith.constant 0 : index
    %c0_171 = arith.constant 0 : index
    %277 = vector.load %arg9[%c7_169, %c0_170, %c0_171] : memref<8x2x32xf32, #tpu.memory_space<vmem>>, vector<1x2x32xf32>
    %278 = vector.shape_cast %277 : vector<1x2x32xf32> to vector<2x32xf32>
    %279 = vector.shape_cast %276 : vector<2x32xf32> to vector<1x2x32xf32>
    tpu.vector_store %arg9[%c7_169, %c0_170, %c0_171], %279 {strides = array<i32>} : memref<8x2x32xf32, #tpu.memory_space<vmem>>, vector<1x2x32xf32>,
    %c0_172 = arith.constant 0 : index
    %c0_173 = arith.constant 0 : index
    %280 = vector.load %arg8[%c0_172, %c0_173] : memref<2x32xf32, #tpu.memory_space<vmem>>, vector<2x32xf32>
    tpu.vector_store %arg8[%c0_172, %c0_173], %276 {strides = array<i32>} : memref<2x32xf32, #tpu.memory_space<vmem>>, vector<2x32xf32>,
    %c0_174 = arith.constant 0 : index
    %c0_175 = arith.constant 0 : index
    %c0_176 = arith.constant 0 : index
    %281 = vector.load %arg9[%c0_174, %c0_175, %c0_176] : memref<8x2x32xf32, #tpu.memory_space<vmem>>, vector<8x2x32xf32>
    %c0_177 = arith.constant 0 : index
    %c0_178 = arith.constant 0 : index
    %282 = vector.load %arg5[%c0_177, %c0_178] : memref<1x32xf32, #tpu.memory_space<vmem>>, vector<1x32xf32>
    %283 = vector.shape_cast %282 : vector<1x32xf32> to vector<1x1x32xf32>
    %284 = vector.broadcast %283 : vector<1x1x32xf32> to vector<8x2x32xf32>
    %285 = arith.mulf %281, %284 : vector<8x2x32xf32>
    %cst_179 = arith.constant dense<0.000000e+00> : vector<8x2xf32>
    %286 = vector.multi_reduction <add>, %285, %cst_179 [2] : vector<8x2x32xf32> to vector<8x2xf32>
    %c0_180 = arith.constant 0 : index
    %c0_181 = arith.constant 0 : index
    %287 = memref.load %arg6[%c0_180, %c0_181] : memref<1x1xf32, #tpu.memory_space<smem>>
    %288 = vector.broadcast %287 : f32 to vector<8x2xf32>
    %289 = arith.addf %286, %288 : vector<8x2xf32>
    %290 = math.tanh %289 : vector<8x2xf32>
    %c0_182 = arith.constant 0 : index
    %c0_183 = arith.constant 0 : index
    %291 = vector.load %arg7[%c0_182, %c0_183] : memref<8x2xf32, #tpu.memory_space<vmem>>, vector<8x2xf32>
    tpu.vector_store %arg7[%c0_182, %c0_183], %290 {strides = array<i32>} : memref<8x2xf32, #tpu.memory_space<vmem>>, vector<8x2xf32>,
    return
  }
  func.func @transform_0(%arg0: i32) -> (i32, i32) {
    %c0_i32 = arith.constant 0 : i32
    %c0_i32_0 = arith.constant 0 : i32
    %c0_i32_1 = arith.constant 0 : i32
    return %c0_i32, %c0_i32_0 : i32, i32
  }
  func.func @transform_1(%arg0: i32) -> (i32, i32, i32, i32) {
    %c0_i32 = arith.constant 0 : i32
    %c0_i32_0 = arith.constant 0 : i32
    %c0_i32_1 = arith.constant 0 : i32
    %c0_i32_2 = arith.constant 0 : i32
    %c0_i32_3 = arith.constant 0 : i32
    return %c0_i32, %c0_i32_0, %c0_i32_1, %c0_i32_2 : i32, i32, i32, i32
  }
  func.func @transform_2(%arg0: i32) -> (i32, i32, i32) {
    %c0_i32 = arith.constant 0 : i32
    %c0_i32_0 = arith.constant 0 : i32
    %c0_i32_1 = arith.constant 0 : i32
    %c0_i32_2 = arith.constant 0 : i32
    return %c0_i32, %c0_i32_0, %c0_i32_1 : i32, i32, i32
  }
  func.func @transform_3(%arg0: i32) -> (i32, i32) {
    %c0_i32 = arith.constant 0 : i32
    %c0_i32_0 = arith.constant 0 : i32
    %c0_i32_1 = arith.constant 0 : i32
    return %c0_i32, %c0_i32_0 : i32, i32
  }
  func.func @transform_4(%arg0: i32) -> (i32, i32) {
    %c0_i32 = arith.constant 0 : i32
    %c0_i32_0 = arith.constant 0 : i32
    %c0_i32_1 = arith.constant 0 : i32
    return %c0_i32, %c0_i32_0 : i32, i32
  }
  func.func @transform_5(%arg0: i32) -> (i32, i32) {
    %c0_i32 = arith.constant 0 : i32
    %c0_i32_0 = arith.constant 0 : i32
    %c0_i32_1 = arith.constant 0 : i32
    return %c0_i32, %c0_i32_0 : i32, i32
  }
  func.func @transform_6(%arg0: i32) -> (i32, i32) {
    %c0_i32 = arith.constant 0 : i32
    %c0_i32_0 = arith.constant 0 : i32
    %c0_i32_1 = arith.constant 0 : i32
    return %c0_i32, %c0_i32_0 : i32, i32
  }
  func.func @transform_7(%arg0: i32) -> (i32, i32) {
    %c0_i32 = arith.constant 0 : i32
    %c0_i32_0 = arith.constant 0 : i32
    %c0_i32_1 = arith.constant 0 : i32
    return %c0_i32, %c0_i32_0 : i32, i32
  }
}

</mosaic_0001>

<bundles_post_ra>
// kernel: tpu_custom_call.1
= control target key start
LH: loop header
LB: loop body
LE: loop exit
PB: predicated region body
PF: predicated region fallthrough
CT: control target
= control target key end

     0   :  { %14 = vsyncpa [#allocation5], 0  ;;  %s3224_s0 = inlined_call_operand.vmem [shape: f32[2,32], index: 0, kind: input, shape index: {}]   ;;  %s3225_s1 = inlined_call_operand.hbm [shape: f32[8,3,2,32], index: 1, kind: input, shape index: {}]   ;;  %s3226_s2 = inlined_call_operand.hbm [shape: f32[3,32,32], index: 2, kind: input, shape index: {}]   ;;  %s3227_s3 = inlined_call_operand.vmem [shape: f32[1,32], index: 3, kind: input, shape index: {}]   ;;  %s3228_s4 = inlined_call_operand.vmem [shape: f32[1,32], index: 4, kind: input, shape index: {}]   ;;  %s3229_s5 = inlined_call_operand.<no memory space> [shape: f32[1,1], index: 5, kind: input, shape index: {}]   ;;  %s3230_s6 = inlined_call_operand.vmem [shape: f32[8,2], index: 6, kind: output, shape index: {0}]   ;;  %s3231_s7 = inlined_call_operand.hbm [shape: f32[2,32], index: 7, kind: output, shape index: {1}]  }
   0x1   :  { %15 = vsyncpa [#allocation8], 0 }
   0x2   :  { %16 = vsyncpa [#allocation6], 0  ;;  %s2906_s24 = smov [#allocation4]   ;;  %s2834_s28 = scalar_lea.hbm %s3225_s1, 768 }
   0x3   :  { %s24_s25 = sshll.u32 %s2906_s24, 4  ;;  %p2835_p0 = scmp.ne.s32.totalorder %s3225_s1, %s2834_s28  ;;  %s25_s25 = int_to_ptr.vmem [resolvable:$true] %s24_s25 }
   0x4   :  { %p2838_p1 = scmp.lt.u32.totalorder %s2834_s28, %s3225_s1 }
   0x6   :  { %p2840_p2 = pnand %p2838_p1, %p2835_p0 }
   0x8   :  { %2843 = shalt.err (!%p2840_p2)
}
   0x9   :  { %s2844_s10 = scalar_lea.vmem %s25_s25, 768  ;;  %p2849_p4 = scmp.lt.s32.totalorder %s25_s25, %s25_s25 }
   0xa   :  { %p2845_p3 = scmp.ne.s32.totalorder %s25_s25, %s2844_s10  ;;  %p2850_p5 = scmp.lt.s32.totalorder %s2844_s10, %s2844_s10 }
   0xc   :  { %p2851_p6 = por %p2850_p5, %p2849_p4 }
   0xe   :  { %p2852_p7 = pnand %p2851_p6, %p2845_p3 }
  0x10   :  { %2855 = shalt.err (!%p2852_p7)
}
  0x11   :  { %s2907_s11 = smov 32   ;;  %s2908_s12 = smov 2  }
  0x12   :  { %30 = dma.hbm_to_vmem [thread:$0]  %s3225_s1, 768, %s25_s25, [#allocation5], %s2907_s11, %s2907_s11, %s2908_s12  }
  0x13   :  { %s2909_s15 = smov [#allocation7]   ;;  %s2856_s19 = scalar_lea.hbm %s3226_s2, 1536 }
  0x14   :  { %s36_s16 = sshll.u32 %s2909_s15, 4  ;;  %p2857_p8 = scmp.ne.s32.totalorder %s3226_s2, %s2856_s19  ;;  %s37_s16 = int_to_ptr.vmem [resolvable:$true] %s36_s16 }
  0x15   :  { %p2860_p9 = scmp.lt.u32.totalorder %s2856_s19, %s3226_s2 }
  0x17   :  { %p2862_p10 = pnand %p2860_p9, %p2857_p8 }
  0x19   :  { %2865 = shalt.err (!%p2862_p10)
}
  0x1a   :  { %s2866_s24 = scalar_lea.vmem %s37_s16, 1536  ;;  %p2871_p12 = scmp.lt.s32.totalorder %s37_s16, %s37_s16 }
  0x1b   :  { %p2867_p11 = scmp.ne.s32.totalorder %s37_s16, %s2866_s24  ;;  %p2872_p13 = scmp.lt.s32.totalorder %s2866_s24, %s2866_s24 }
  0x1d   :  { %p2873_p0 = por %p2872_p13, %p2871_p12 }
  0x1f   :  { %p2874_p1 = pnand %p2873_p0, %p2867_p11 }
  0x21   :  { %2877 = shalt.err (!%p2874_p1)
}
  0x22   :  { %s2910_s1 = smov 128   ;;  %s2911_s25 = smov 8  }
  0x23   :  { %42 = dma.hbm_to_vmem [thread:$0]  %s3226_s2, 1536, %s37_s16, [#allocation8], %s2910_s1, %s2910_s1, %s2911_s25  }
  0x24   :  { %2900 = dma.done.wait [#allocation5], 768  }
  0x25   :  { %2901 = vsyncadd [#allocation5], 4294966528 }
  0x26   :  { %2902 = dma.done.wait [#allocation8], 1536  }
  0x27   :  { %2903 = vsyncadd [#allocation8], 4294965760  ;;  %v2912_v0 = vmov 0.0|0.0   ;;  %vm2913_vm0 = vmmov 0   ;;  %v2914_v1 = vmov 0.0   ;;  %v55_v2 = vld [vmem:[#allocation7] sm:$0xff] }
  0x28   :  { %2584 = vmatprep.subr.bf16.mxu0 %v2912_v0  ;;  %2328 = vmatprep.mubr.msk.f32.mxu0 %vm2913_vm0, %v2914_v1  ;;  %v56_v3 = vld [vmem:[#allocation7 + $0x8] sm:$0xff]  ;;  %v57_v4 = vld [vmem:[#allocation7 + $0x10] sm:$0xff]  ;;  %v58_v6 = vld [vmem:[#allocation7 + $0x18] sm:$0xff]  ;;  %vm71_vm1 = vcmask 261120   ;;  %vm317_vm2 = vcmask 254976  }
  0x29   :  { %2590 = vmatprep.subr.bf16.mxu1 %v2912_v0  ;;  %2339 = vmatprep.mubr.msk.f32.mxu1 %vm2913_vm0, %v2914_v1  ;;  %v2986_v5 = vpack.c.bf16 %v56_v3, %v55_v2  ;;  %v60_v7 = vld [vmem:[#allocation7 + $0x20] sm:$0xff]  ;;  %v61_v8 = vld [vmem:[#allocation7 + $0x28] sm:$0xff]  ;;  %v62_v9 = vld [vmem:[#allocation7 + $0x30] sm:$0xff]  ;;  %v2989_v11 = vpack.c.bf16 %v58_v6, %v57_v4 }
  0x2a   :  { %v63_v10 = vld [vmem:[#allocation7 + $0x38] sm:$0xff]  ;;  %v2991_v12 = vpack.c.bf16 %v61_v8, %v60_v7  ;;  %v65_v13 = vld [vmem:[#allocation7 + $0x40] sm:$0xff]  ;;  %v66_v14 = vld [vmem:[#allocation7 + $0x48] sm:$0xff] }
  0x2b   :  { %2586 = vmatpush3.bf16.msra.mxu0 %v2986_v5  ;;  %v2995_v15 = vpack.c.bf16 %v63_v10, %v62_v9  ;;  %v70_v16 = vld [vmem:[%s3224_s0] sm:$0x3]  ;;  %v3002_v17 = vpack.c.bf16 %v66_v14, %v65_v13  ;;  %v67_v18 = vld [vmem:[#allocation7 + $0x50] sm:$0xff]  ;;  %v68_v19 = vld [vmem:[#allocation7 + $0x58] sm:$0xff] }
  0x2c   :  { %2587 = vmatprep.subr.bf16.mxu0 %v2912_v0  ;;  %2592 = vmatpush3.bf16.msra.mxu1 %v2991_v12  ;;  %v3009_v20 = vpack.c.bf16 %v68_v19, %v67_v18  ;;  %v215_v21 = vld [vmem:[#allocation4] sm:$0x3]  ;;  %v224_v23 = vld [vmem:[#allocation4 + $0x2] sm:$0x3]  ;;  %v3033_v36 = vld [vmem:[%s3227_s3] ss:$0 sm:$0xff] }
  0x2d   :  { %2593 = vmatprep.subr.bf16.mxu1 %v2912_v0  ;;  %v233_v40 = vld [vmem:[#allocation4 + $0x4] sm:$0x3]  ;;  %v3051_v49 = vld [vmem:[%s3228_s4] ss:$0 sm:$0xff]  ;;  %v463_v53 = vld [vmem:[#allocation4 + $0x6] sm:$0x3] }
  0x2e   :  { %v472_v57 = vld [vmem:[#allocation4 + $0x8] sm:$0x3]  ;;  %v481_v10 = vld [vmem:[#allocation4 + $0xa] sm:$0x3]  ;;  %s2915_s4 = smov [#allocation9]  }
  0x2f   :  { %2589 = vmatpush3.bf16.msra.mxu0 %v2989_v11  ;;  %s2146_s8 = sshll.u32 %s2915_s4, 4  ;;  %s2147_s8 = int_to_ptr.vmem [resolvable:$true] %s2146_s8 }
  0x30   :  { %2596 = vmatprep.subr.bf16.mxu0 %v2912_v0  ;;  %2595 = vmatpush3.bf16.msra.mxu1 %v2995_v15  ;;  %s2878_s9 = scalar_lea.vmem %s2147_s8, 32  ;;  %p2883_p3 = scmp.lt.s32.totalorder %s2147_s8, %s2147_s8 }
  0x31   :  { %2602 = vmatprep.subr.bf16.mxu1 %v2912_v0  ;;  %p2879_p2 = scmp.ne.s32.totalorder %s2147_s8, %s2878_s9  ;;  %p2884_p4 = scmp.lt.s32.totalorder %s2878_s9, %s2878_s9 }
  0x32   :  { %2329 = vmatmul.mubr.msk.f32.vlgmr.msra.gmra.mrb[0].mxu0 %vm71_vm1, %v70_v16 }
  0x33   :  { %2598 = vmatpush3.bf16.msra.mxu0 %v3002_v17  ;;  %2350 = vmatprep.mubr.msk.f32.mxu0 %vm2913_vm0, %v2914_v1  ;;  %p2885_p5 = por %p2884_p4, %p2883_p3 }
  0x34   :  { %2340 = vmatmul.mubr.msk.f32.vlgmr.msra.gmra.mrb[0].mxu1 %vm71_vm1, %v70_v16  ;;  %2599 = vmatprep.subr.bf16.mxu0 %v2912_v0 }
  0x35   :  { %2604 = vmatpush3.bf16.msra.mxu1 %v2986_v5  ;;  %2361 = vmatprep.mubr.msk.f32.mxu1 %vm2913_vm0, %v2914_v1  ;;  %p2886_p6 = pnand %p2885_p5, %p2879_p2 }
  0x36   :  { %2605 = vmatprep.subr.bf16.mxu1 %v2912_v0 }
  0x37   :  { %2601 = vmatpush3.bf16.msra.mxu0 %v3009_v20 }
  0x38   :  { %2608 = vmatprep.subr.bf16.mxu0 %v2912_v0 }
  0x39   :  { %2607 = vmatpush3.bf16.msra.mxu1 %v2989_v11 }
  0x3a   :  { %2351 = vmatmul.mubr.msk.f32.vlgmr.msra.gmra.mrb[2].mxu0 %vm71_vm1, %v70_v16  ;;  %2614 = vmatprep.subr.bf16.mxu1 %v2912_v0 }
  0x3b   :  { %2610 = vmatpush3.bf16.msra.mxu0 %v2991_v12  ;;  %2372 = vmatprep.mubr.msk.f32.mxu0 %vm2913_vm0, %v2914_v1 }
  0x3c   :  { %2611 = vmatprep.subr.bf16.mxu0 %v2912_v0 }
  0x3f   :  { %2613 = vmatpush3.bf16.msra.mxu0 %v2995_v15 }
  0x40   :  { %2620 = vmatprep.subr.bf16.mxu0 %v2912_v0 }
 0x105   :  { %v141_v22 = vpop.f32.mrb[0].mxu0 }
 0x106   :  { %v216_v24 = vadd.f32 %v215_v21, %v141_v22  ;;  %v2330_v25 = vpop.f32.mrb[1].mxu0 }
 0x107   :  { %v211_v26 = vpop.f32.mrb[0].mxu1 }
 0x108   :  { %v2160_v27 = vmul.f32 -1.442695, %v216_v24  ;;  %v225_v28 = vadd.f32 %v224_v23, %v211_v26  ;;  %v2341_v29 = vpop.f32.mrb[1].mxu1 }
 0x10a   :  { %2738 = vpow2.f32 %v2160_v27  ;;  %v2161_v30 = vmul.f32 -1.442695, %v225_v28  ;;  %v705_v27 = vld [vmem:[#allocation4 + $0xc] sm:$0x3] }
 0x10c   :  { %2740 = vpow2.f32 %v2161_v30 }
 0x10d   :  { %v306_v31 = vpop.f32.mrb[2].mxu0 }
 0x10e   :  { %v2352_v32 = vpop.f32.mrb[3].mxu0  ;;  %v307_v38 = vadd.f32 %v3033_v36, %v306_v31  ;;  %v714_v31 = vld [vmem:[#allocation4 + $0xe] sm:$0x3] }
 0x114   :  { %v2739_v33 = vpop.eup %2738 }
 0x115   :  { %v220_v34 = vadd.f32 1.0, %v2739_v33 }
 0x116   :  { %v2741_v35 = vpop.eup %2740 }
 0x117   :  { %2742 = vrcp.f32 %v220_v34  ;;  %v229_v37 = vadd.f32 1.0, %v2741_v35 }
 0x119   :  { %2744 = vrcp.f32 %v229_v37 }
 0x121   :  { %v2743_v39 = vpop.eup %2742 }
 0x122   :  { %v310_v41 = vmul.f32 %v2743_v39, %v307_v38 }
 0x123   :  { %v2745_v43 = vpop.eup %2744 }
 0x124   :  { %v311_v42 = vadd.f32 %v310_v41, %v233_v40  ;;  %v313_v44 = vsub.f32 1.0, %v2745_v43  ;;  %v315_v47 = vmul.f32 %v2745_v43, %v70_v16 }
 0x126   :  { %2746 = vtanh.f32 %v311_v42 }
 0x130   :  { %v2747_v45 = vpop.eup %2746 }
 0x131   :  { %v314_v46 = vmul.f32 %v2747_v45, %v313_v44 }
 0x133   :  { %v316_v48 = vadd.f32 %v315_v47, %v314_v46  ;;  %v723_v46 = vld [vmem:[#allocation4 + $0x10] sm:$0x3] }
 0x135   :  { %318 = vst.msk [vmem:[#allocation2] sm:$0x3] %vm317_vm2, %v316_v48  ;;  %2362 = vmatmul.mubr.msk.f32.vlgmr.msra.gmra.mrb[2].mxu1 %vm71_vm1, %v316_v48  ;;  %2373 = vmatmul.mubr.msk.f32.vlgmr.msra.gmra.mrb[4].mxu0 %vm71_vm1, %v316_v48 }
 0x136   :  { %2616 = vmatpush3.bf16.msra.mxu1 %v3002_v17  ;;  %2383 = vmatprep.mubr.msk.f32.mxu1 %vm2913_vm0, %v2914_v1 }
 0x137   :  { %2617 = vmatprep.subr.bf16.mxu1 %v2912_v0  ;;  %2622 = vmatpush3.bf16.msra.mxu0 %v2986_v5 }
 0x138   :  { %2623 = vmatprep.subr.bf16.mxu0 %v2912_v0  ;;  %2394 = vmatprep.mubr.msk.f32.mxu0 %vm2913_vm0, %v2914_v1 }
 0x13a   :  { %2619 = vmatpush3.bf16.msra.mxu1 %v3009_v20 }
 0x13b   :  { %2626 = vmatprep.subr.bf16.mxu1 %v2912_v0  ;;  %2625 = vmatpush3.bf16.msra.mxu0 %v2989_v11 }
 0x13c   :  { %v2014_v50 = vld [vmem:[#allocation2] sm:$0x3]  ;;  %2632 = vmatprep.subr.bf16.mxu0 %v2912_v0 }
 0x13d   :  { %2384 = vmatmul.mubr.msk.f32.vlgmr.msra.gmra.mrb[4].mxu1 %vm71_vm1, %v316_v48  ;;  %v2029_v51 = vmul.f32 %v3051_v49, %v2014_v50 }
 0x13e   :  { %2628 = vmatpush3.bf16.msra.mxu1 %v2991_v12  ;;  %2405 = vmatprep.mubr.msk.f32.mxu1 %vm2913_vm0, %v2914_v1 }
 0x13f   :  { %v2037_v52 = vsel %vm317_vm2, %v2029_v51, 0.0  ;;  %2629 = vmatprep.subr.bf16.mxu1 %v2912_v0 }
 0x140   :  { %2038 = vadd.xlane.f32.xlu0 %v2037_v52 }
 0x142   :  { %2631 = vmatpush3.bf16.msra.mxu1 %v2995_v15 }
 0x143   :  { %2638 = vmatprep.subr.bf16.mxu1 %v2912_v0 }
 0x208   :  { %v388_v54 = vpop.f32.mrb[2].mxu1  ;;  %v458_v55 = vpop.f32.mrb[4].mxu0 }
 0x209   :  { %v464_v56 = vadd.f32 %v463_v53, %v388_v54  ;;  %v2363_v58 = vpop.f32.mrb[3].mxu1  ;;  %v2374_v59 = vpop.f32.mrb[5].mxu0  ;;  %v473_v61 = vadd.f32 %v472_v57, %v458_v55 }
 0x20a   :  { %v947_v59 = vld [vmem:[#allocation4 + $0x12] sm:$0x3] }
 0x20b   :  { %v2166_v60 = vmul.f32 -1.442695, %v464_v56  ;;  %v2167_v62 = vmul.f32 -1.442695, %v473_v61 }
 0x20d   :  { %2748 = vpow2.f32 %v2166_v60 }
 0x20e   :  { %2750 = vpow2.f32 %v2167_v62 }
 0x210   :  { %v548_v63 = vpop.f32.mrb[4].mxu1 }
 0x211   :  { %v2385_v2 = vpop.f32.mrb[5].mxu1  ;;  %v549_v8 = vadd.f32 %v3033_v36, %v548_v63  ;;  %v956_v63 = vld [vmem:[#allocation4 + $0x14] sm:$0x3] }
 0x217   :  { %v2749_v3 = vpop.eup %2748 }
 0x218   :  { %v468_v4 = vadd.f32 1.0, %v2749_v3  ;;  %v2751_v6 = vpop.eup %2750 }
 0x219   :  { %v477_v7 = vadd.f32 1.0, %v2751_v6 }
 0x21a   :  { %2752 = vrcp.f32 %v468_v4 }
 0x21b   :  { %2754 = vrcp.f32 %v477_v7 }
 0x224   :  { %v2753_v9 = vpop.eup %2752 }
 0x225   :  { %v552_v13 = vmul.f32 %v2753_v9, %v549_v8  ;;  %v2755_v16 = vpop.eup %2754 }
 0x226   :  { %v555_v18 = vsub.f32 1.0, %v2755_v16  ;;  %v557_v22 = vmul.f32 %v2755_v16, %v316_v48 }
 0x227   :  { %v553_v14 = vadd.f32 %v552_v13, %v481_v10 }
 0x229   :  { %2756 = vtanh.f32 %v553_v14 }
 0x233   :  { %v2757_v19 = vpop.eup %2756 }
 0x234   :  { %v556_v21 = vmul.f32 %v2757_v19, %v555_v18 }
 0x236   :  { %v558_v23 = vadd.f32 %v557_v22, %v556_v21  ;;  %v965_v21 = vld [vmem:[#allocation4 + $0x16] sm:$0x3] }
 0x238   :  { %560 = vst.msk [vmem:[#allocation2 + $0x2] sm:$0x3] %vm317_vm2, %v558_v23  ;;  %2395 = vmatmul.mubr.msk.f32.vlgmr.msra.gmra.mrb[6].mxu0 %vm71_vm1, %v558_v23  ;;  %2406 = vmatmul.mubr.msk.f32.vlgmr.msra.gmra.mrb[6].mxu1 %vm71_vm1, %v558_v23 }
 0x239   :  { %2634 = vmatpush3.bf16.msra.mxu0 %v3002_v17  ;;  %2416 = vmatprep.mubr.msk.f32.mxu0 %vm2913_vm0, %v2914_v1 }
 0x23a   :  { %2635 = vmatprep.subr.bf16.mxu0 %v2912_v0  ;;  %2640 = vmatpush3.bf16.msra.mxu1 %v2986_v5 }
 0x23b   :  { %2641 = vmatprep.subr.bf16.mxu1 %v2912_v0  ;;  %2427 = vmatprep.mubr.msk.f32.mxu1 %vm2913_vm0, %v2914_v1 }
 0x23d   :  { %2637 = vmatpush3.bf16.msra.mxu0 %v3009_v20 }
 0x23e   :  { %2644 = vmatprep.subr.bf16.mxu0 %v2912_v0  ;;  %2643 = vmatpush3.bf16.msra.mxu1 %v2989_v11 }
 0x23f   :  { %v2015_v24 = vld [vmem:[#allocation2 + $0x2] sm:$0x3]  ;;  %2650 = vmatprep.subr.bf16.mxu1 %v2912_v0 }
 0x240   :  { %2417 = vmatmul.mubr.msk.f32.vlgmr.msra.gmra.mrb[8].mxu0 %vm71_vm1, %v558_v23  ;;  %v2030_v25 = vmul.f32 %v3051_v49, %v2015_v24 }
 0x241   :  { %2646 = vmatpush3.bf16.msra.mxu0 %v2991_v12  ;;  %2438 = vmatprep.mubr.msk.f32.mxu0 %vm2913_vm0, %v2914_v1 }
 0x242   :  { %v2040_v26 = vsel %vm317_vm2, %v2030_v25, 0.0  ;;  %2647 = vmatprep.subr.bf16.mxu0 %v2912_v0 }
 0x243   :  { %2041 = vadd.xlane.f32.xlu0 %v2040_v26 }
 0x245   :  { %2649 = vmatpush3.bf16.msra.mxu0 %v2995_v15 }
 0x246   :  { %2656 = vmatprep.subr.bf16.mxu0 %v2912_v0 }
 0x30b   :  { %v630_v28 = vpop.f32.mrb[6].mxu0  ;;  %v700_v29 = vpop.f32.mrb[6].mxu1 }
 0x30c   :  { %v706_v30 = vadd.f32 %v705_v27, %v630_v28  ;;  %v2396_v32 = vpop.f32.mrb[7].mxu0  ;;  %v2407_v33 = vpop.f32.mrb[7].mxu1  ;;  %v715_v35 = vadd.f32 %v714_v31, %v700_v29 }
 0x30d   :  { %v1189_v33 = vld [vmem:[#allocation4 + $0x18] sm:$0x3] }
 0x30e   :  { %v2171_v34 = vmul.f32 -1.442695, %v706_v30  ;;  %v2172_v37 = vmul.f32 -1.442695, %v715_v35 }
 0x310   :  { %2758 = vpow2.f32 %v2171_v34 }
 0x311   :  { %2760 = vpow2.f32 %v2172_v37 }
 0x313   :  { %v790_v38 = vpop.f32.mrb[8].mxu0 }
 0x314   :  { %v2418_v39 = vpop.f32.mrb[9].mxu0  ;;  %v791_v44 = vadd.f32 %v3033_v36, %v790_v38  ;;  %v1198_v38 = vld [vmem:[#allocation4 + $0x1a] sm:$0x3] }
 0x31a   :  { %v2759_v40 = vpop.eup %2758 }
 0x31b   :  { %v710_v41 = vadd.f32 1.0, %v2759_v40  ;;  %v2761_v42 = vpop.eup %2760 }
 0x31c   :  { %v719_v43 = vadd.f32 1.0, %v2761_v42 }
 0x31d   :  { %2762 = vrcp.f32 %v710_v41 }
 0x31e   :  { %2764 = vrcp.f32 %v719_v43 }
 0x327   :  { %v2763_v45 = vpop.eup %2762 }
 0x328   :  { %v794_v47 = vmul.f32 %v2763_v45, %v791_v44  ;;  %v2765_v50 = vpop.eup %2764 }
 0x329   :  { %v797_v51 = vsub.f32 1.0, %v2765_v50  ;;  %v799_v54 = vmul.f32 %v2765_v50, %v558_v23 }
 0x32a   :  { %v795_v48 = vadd.f32 %v794_v47, %v723_v46 }
 0x32c   :  { %2766 = vtanh.f32 %v795_v48 }
 0x336   :  { %v2767_v52 = vpop.eup %2766 }
 0x337   :  { %v798_v53 = vmul.f32 %v2767_v52, %v797_v51 }
 0x339   :  { %v800_v55 = vadd.f32 %v799_v54, %v798_v53  ;;  %v1207_v53 = vld [vmem:[#allocation4 + $0x1c] sm:$0x3] }
 0x33b   :  { %802 = vst.msk [vmem:[#allocation2 + $0x4] sm:$0x3] %vm317_vm2, %v800_v55  ;;  %2428 = vmatmul.mubr.msk.f32.vlgmr.msra.gmra.mrb[8].mxu1 %vm71_vm1, %v800_v55  ;;  %2439 = vmatmul.mubr.msk.f32.vlgmr.msra.gmra.mrb[10].mxu0 %vm71_vm1, %v800_v55 }
 0x33c   :  { %2652 = vmatpush3.bf16.msra.mxu1 %v3002_v17  ;;  %2449 = vmatprep.mubr.msk.f32.mxu1 %vm2913_vm0, %v2914_v1 }
 0x33d   :  { %2653 = vmatprep.subr.bf16.mxu1 %v2912_v0  ;;  %2658 = vmatpush3.bf16.msra.mxu0 %v2986_v5 }
 0x33e   :  { %2659 = vmatprep.subr.bf16.mxu0 %v2912_v0  ;;  %2460 = vmatprep.mubr.msk.f32.mxu0 %vm2913_vm0, %v2914_v1 }
 0x340   :  { %2655 = vmatpush3.bf16.msra.mxu1 %v3009_v20 }
 0x341   :  { %2662 = vmatprep.subr.bf16.mxu1 %v2912_v0  ;;  %2661 = vmatpush3.bf16.msra.mxu0 %v2989_v11 }
 0x342   :  { %v2016_v56 = vld [vmem:[#allocation2 + $0x4] sm:$0x3]  ;;  %2668 = vmatprep.subr.bf16.mxu0 %v2912_v0 }
 0x343   :  { %2450 = vmatmul.mubr.msk.f32.vlgmr.msra.gmra.mrb[10].mxu1 %vm71_vm1, %v800_v55  ;;  %v2031_v57 = vmul.f32 %v3051_v49, %v2016_v56 }
 0x344   :  { %2664 = vmatpush3.bf16.msra.mxu1 %v2991_v12  ;;  %2471 = vmatprep.mubr.msk.f32.mxu1 %vm2913_vm0, %v2914_v1 }
 0x345   :  { %v2043_v58 = vsel %vm317_vm2, %v2031_v57, 0.0  ;;  %2665 = vmatprep.subr.bf16.mxu1 %v2912_v0 }
 0x346   :  { %2044 = vadd.xlane.f32.xlu1 %v2043_v58 }
 0x348   :  { %2667 = vmatpush3.bf16.msra.mxu1 %v2995_v15 }
 0x349   :  { %2674 = vmatprep.subr.bf16.mxu1 %v2912_v0 }
 0x40e   :  { %v872_v60 = vpop.f32.mrb[8].mxu1  ;;  %v942_v61 = vpop.f32.mrb[10].mxu0 }
 0x40f   :  { %v948_v62 = vadd.f32 %v947_v59, %v872_v60  ;;  %v2429_v2 = vpop.f32.mrb[9].mxu1  ;;  %v2440_v3 = vpop.f32.mrb[11].mxu0  ;;  %v957_v6 = vadd.f32 %v956_v63, %v942_v61 }
 0x410   :  { %v1431_v3 = vld [vmem:[#allocation4 + $0x1e] sm:$0x3] }
 0x411   :  { %v2176_v4 = vmul.f32 -1.442695, %v948_v62  ;;  %v2177_v7 = vmul.f32 -1.442695, %v957_v6 }
 0x413   :  { %2768 = vpow2.f32 %v2176_v4 }
 0x414   :  { %2770 = vpow2.f32 %v2177_v7 }
 0x416   :  { %v1032_v8 = vpop.f32.mrb[10].mxu1 }
 0x417   :  { %v2451_v9 = vpop.f32.mrb[11].mxu1  ;;  %v1033_v18 = vadd.f32 %v3033_v36, %v1032_v8  ;;  %v1440_v8 = vld [vmem:[#allocation4 + $0x20] sm:$0x3] }
 0x41d   :  { %v2769_v10 = vpop.eup %2768 }
 0x41e   :  { %v952_v13 = vadd.f32 1.0, %v2769_v10  ;;  %v2771_v14 = vpop.eup %2770 }
 0x41f   :  { %v961_v16 = vadd.f32 1.0, %v2771_v14 }
 0x420   :  { %2772 = vrcp.f32 %v952_v13 }
 0x421   :  { %2774 = vrcp.f32 %v961_v16 }
 0x42a   :  { %v2773_v19 = vpop.eup %2772 }
 0x42b   :  { %v1036_v22 = vmul.f32 %v2773_v19, %v1033_v18  ;;  %v2775_v24 = vpop.eup %2774 }
 0x42c   :  { %v1039_v25 = vsub.f32 1.0, %v2775_v24  ;;  %v1041_v28 = vmul.f32 %v2775_v24, %v800_v55 }
 0x42d   :  { %v1037_v23 = vadd.f32 %v1036_v22, %v965_v21 }
 0x42f   :  { %2776 = vtanh.f32 %v1037_v23 }
 0x439   :  { %v2777_v26 = vpop.eup %2776 }
 0x43a   :  { %v1040_v27 = vmul.f32 %v2777_v26, %v1039_v25 }
 0x43c   :  { %v1042_v29 = vadd.f32 %v1041_v28, %v1040_v27  ;;  %v1449_v27 = vld [vmem:[#allocation4 + $0x22] sm:$0x3] }
 0x43e   :  { %1044 = vst.msk [vmem:[#allocation2 + $0x6] sm:$0x3] %vm317_vm2, %v1042_v29  ;;  %2461 = vmatmul.mubr.msk.f32.vlgmr.msra.gmra.mrb[12].mxu0 %vm71_vm1, %v1042_v29  ;;  %2472 = vmatmul.mubr.msk.f32.vlgmr.msra.gmra.mrb[12].mxu1 %vm71_vm1, %v1042_v29 }
 0x43f   :  { %2670 = vmatpush3.bf16.msra.mxu0 %v3002_v17  ;;  %2482 = vmatprep.mubr.msk.f32.mxu0 %vm2913_vm0, %v2914_v1 }
 0x440   :  { %2671 = vmatprep.subr.bf16.mxu0 %v2912_v0  ;;  %2676 = vmatpush3.bf16.msra.mxu1 %v2986_v5 }
 0x441   :  { %2677 = vmatprep.subr.bf16.mxu1 %v2912_v0  ;;  %2493 = vmatprep.mubr.msk.f32.mxu1 %vm2913_vm0, %v2914_v1 }
 0x443   :  { %2673 = vmatpush3.bf16.msra.mxu0 %v3009_v20 }
 0x444   :  { %2680 = vmatprep.subr.bf16.mxu0 %v2912_v0  ;;  %2679 = vmatpush3.bf16.msra.mxu1 %v2989_v11 }
 0x445   :  { %v2017_v30 = vld [vmem:[#allocation2 + $0x6] sm:$0x3]  ;;  %2686 = vmatprep.subr.bf16.mxu1 %v2912_v0 }
 0x446   :  { %2483 = vmatmul.mubr.msk.f32.vlgmr.msra.gmra.mrb[14].mxu0 %vm71_vm1, %v1042_v29  ;;  %v2032_v31 = vmul.f32 %v3051_v49, %v2017_v30 }
 0x447   :  { %2682 = vmatpush3.bf16.msra.mxu0 %v2991_v12  ;;  %2504 = vmatprep.mubr.msk.f32.mxu0 %vm2913_vm0, %v2914_v1 }
 0x448   :  { %v2046_v32 = vsel %vm317_vm2, %v2032_v31, 0.0  ;;  %2683 = vmatprep.subr.bf16.mxu0 %v2912_v0 }
 0x449   :  { %2047 = vadd.xlane.f32.xlu1 %v2046_v32 }
 0x44b   :  { %2685 = vmatpush3.bf16.msra.mxu0 %v2995_v15 }
 0x44c   :  { %2692 = vmatprep.subr.bf16.mxu0 %v2912_v0 }
 0x511   :  { %v1114_v34 = vpop.f32.mrb[12].mxu0  ;;  %v1184_v35 = vpop.f32.mrb[12].mxu1 }
 0x512   :  { %v1190_v37 = vadd.f32 %v1189_v33, %v1114_v34  ;;  %v2462_v39 = vpop.f32.mrb[13].mxu0  ;;  %v2473_v40 = vpop.f32.mrb[13].mxu1  ;;  %v1199_v42 = vadd.f32 %v1198_v38, %v1184_v35 }
 0x514   :  { %v2181_v41 = vmul.f32 -1.442695, %v1190_v37  ;;  %v2182_v43 = vmul.f32 -1.442695, %v1199_v42  ;;  %v1682_v42 = vld [vmem:[#allocation4 + $0x26] sm:$0x3] }
 0x516   :  { %2778 = vpow2.f32 %v2181_v41 }
 0x517   :  { %2780 = vpow2.f32 %v2182_v43 }
 0x519   :  { %v1274_v44 = vpop.f32.mrb[14].mxu0 }
 0x51a   :  { %v2484_v45 = vpop.f32.mrb[15].mxu0  ;;  %v1275_v51 = vadd.f32 %v3033_v36, %v1274_v44 }
 0x520   :  { %v2779_v46 = vpop.eup %2778 }
 0x521   :  { %v1194_v47 = vadd.f32 1.0, %v2779_v46  ;;  %v2781_v48 = vpop.eup %2780 }
 0x522   :  { %v1203_v50 = vadd.f32 1.0, %v2781_v48 }
 0x523   :  { %2782 = vrcp.f32 %v1194_v47 }
 0x524   :  { %2784 = vrcp.f32 %v1203_v50 }
 0x52d   :  { %v2783_v52 = vpop.eup %2782 }
 0x52e   :  { %v1278_v54 = vmul.f32 %v2783_v52, %v1275_v51  ;;  %v2785_v56 = vpop.eup %2784 }
 0x52f   :  { %v1281_v57 = vsub.f32 1.0, %v2785_v56  ;;  %v1283_v60 = vmul.f32 %v2785_v56, %v1042_v29 }
 0x530   :  { %v1279_v55 = vadd.f32 %v1278_v54, %v1207_v53 }
 0x532   :  { %2786 = vtanh.f32 %v1279_v55  ;;  %v1691_v55 = vld [vmem:[#allocation4 + $0x28] sm:$0x3] }
 0x53c   :  { %v2787_v58 = vpop.eup %2786 }
 0x53d   :  { %v1282_v59 = vmul.f32 %v2787_v58, %v1281_v57 }
 0x53f   :  { %v1284_v61 = vadd.f32 %v1283_v60, %v1282_v59 }
 0x541   :  { %1286 = vst.msk [vmem:[#allocation2 + $0x8] sm:$0x3] %vm317_vm2, %v1284_v61  ;;  %2494 = vmatmul.mubr.msk.f32.vlgmr.msra.gmra.mrb[14].mxu1 %vm71_vm1, %v1284_v61  ;;  %2505 = vmatmul.mubr.msk.f32.vlgmr.msra.gmra.mrb[16].mxu0 %vm71_vm1, %v1284_v61 }
 0x542   :  { %2688 = vmatpush3.bf16.msra.mxu1 %v3002_v17  ;;  %2515 = vmatprep.mubr.msk.f32.mxu1 %vm2913_vm0, %v2914_v1 }
 0x543   :  { %2689 = vmatprep.subr.bf16.mxu1 %v2912_v0  ;;  %2694 = vmatpush3.bf16.msra.mxu0 %v2986_v5 }
 0x544   :  { %2695 = vmatprep.subr.bf16.mxu0 %v2912_v0  ;;  %2526 = vmatprep.mubr.msk.f32.mxu0 %vm2913_vm0, %v2914_v1 }
 0x546   :  { %2691 = vmatpush3.bf16.msra.mxu1 %v3009_v20 }
 0x547   :  { %2698 = vmatprep.subr.bf16.mxu1 %v2912_v0  ;;  %2697 = vmatpush3.bf16.msra.mxu0 %v2989_v11 }
 0x548   :  { %v2018_v62 = vld [vmem:[#allocation2 + $0x8] sm:$0x3]  ;;  %2704 = vmatprep.subr.bf16.mxu0 %v2912_v0 }
 0x549   :  { %2516 = vmatmul.mubr.msk.f32.vlgmr.msra.gmra.mrb[16].mxu1 %vm71_vm1, %v1284_v61  ;;  %v2033_v63 = vmul.f32 %v3051_v49, %v2018_v62 }
 0x54a   :  { %2700 = vmatpush3.bf16.msra.mxu1 %v2991_v12  ;;  %2537 = vmatprep.mubr.msk.f32.mxu1 %vm2913_vm0, %v2914_v1 }
 0x54b   :  { %v2049_v2 = vsel %vm317_vm2, %v2033_v63, 0.0  ;;  %2701 = vmatprep.subr.bf16.mxu1 %v2912_v0 }
 0x54c   :  { %2050 = vadd.xlane.f32.xlu0 %v2049_v2 }
 0x54e   :  { %2703 = vmatpush3.bf16.msra.mxu1 %v2995_v15 }
 0x54f   :  { %2710 = vmatprep.subr.bf16.mxu1 %v2912_v0 }
 0x614   :  { %v1356_v4 = vpop.f32.mrb[14].mxu1  ;;  %v1426_v6 = vpop.f32.mrb[16].mxu0 }
 0x615   :  { %v1432_v7 = vadd.f32 %v1431_v3, %v1356_v4  ;;  %v2495_v9 = vpop.f32.mrb[15].mxu1  ;;  %v2506_v10 = vpop.f32.mrb[17].mxu0  ;;  %v1441_v14 = vadd.f32 %v1440_v8, %v1426_v6  ;;  %v1915_v6 = vld [vmem:[#allocation4 + $0x2a] sm:$0x3] }
 0x617   :  { %v2186_v13 = vmul.f32 -1.442695, %v1432_v7  ;;  %v2187_v16 = vmul.f32 -1.442695, %v1441_v14 }
 0x619   :  { %2788 = vpow2.f32 %v2186_v13 }
 0x61a   :  { %2790 = vpow2.f32 %v2187_v16 }
 0x61c   :  { %v1516_v18 = vpop.f32.mrb[16].mxu1 }
 0x61d   :  { %v2517_v19 = vpop.f32.mrb[17].mxu1  ;;  %v1517_v25 = vadd.f32 %v3033_v36, %v1516_v18 }
 0x623   :  { %v2789_v21 = vpop.eup %2788 }
 0x624   :  { %v1436_v22 = vadd.f32 1.0, %v2789_v21  ;;  %v2791_v23 = vpop.eup %2790 }
 0x625   :  { %v1445_v24 = vadd.f32 1.0, %v2791_v23 }
 0x626   :  { %2792 = vrcp.f32 %v1436_v22 }
 0x627   :  { %2794 = vrcp.f32 %v1445_v24 }
 0x630   :  { %v2793_v26 = vpop.eup %2792 }
 0x631   :  { %v1520_v28 = vmul.f32 %v2793_v26, %v1517_v25  ;;  %v2795_v30 = vpop.eup %2794  ;;  %v1933_v25 = vld [vmem:[#allocation4 + $0x2e] sm:$0x3] }
 0x632   :  { %v1523_v31 = vsub.f32 1.0, %v2795_v30  ;;  %v1525_v34 = vmul.f32 %v2795_v30, %v1284_v61 }
 0x633   :  { %v1521_v29 = vadd.f32 %v1520_v28, %v1449_v27 }
 0x635   :  { %2796 = vtanh.f32 %v1521_v29 }
 0x63f   :  { %v2797_v32 = vpop.eup %2796 }
 0x640   :  { %v1524_v33 = vmul.f32 %v2797_v32, %v1523_v31 }
 0x642   :  { %v1526_v35 = vadd.f32 %v1525_v34, %v1524_v33 }
 0x644   :  { %1528 = vst.msk [vmem:[#allocation2 + $0xa] sm:$0x3] %vm317_vm2, %v1526_v35  ;;  %2527 = vmatmul.mubr.msk.f32.vlgmr.msra.gmra.mrb[18].mxu0 %vm71_vm1, %v1526_v35  ;;  %2538 = vmatmul.mubr.msk.f32.vlgmr.msra.gmra.mrb[18].mxu1 %vm71_vm1, %v1526_v35 }
 0x645   :  { %2706 = vmatpush3.bf16.msra.mxu0 %v3002_v17  ;;  %2548 = vmatprep.mubr.msk.f32.mxu0 %vm2913_vm0, %v2914_v1 }
 0x646   :  { %2707 = vmatprep.subr.bf16.mxu0 %v2912_v0  ;;  %2712 = vmatpush3.bf16.msra.mxu1 %v2986_v5 }
 0x647   :  { %2713 = vmatprep.subr.bf16.mxu1 %v2912_v0  ;;  %2559 = vmatprep.mubr.msk.f32.mxu1 %vm2913_vm0, %v2914_v1 }
 0x649   :  { %2709 = vmatpush3.bf16.msra.mxu0 %v3009_v20 }
 0x64a   :  { %2716 = vmatprep.subr.bf16.mxu0 %v2912_v0  ;;  %2715 = vmatpush3.bf16.msra.mxu1 %v2989_v11  ;;  %v1673_v11 = vld [vmem:[#allocation4 + $0x24] sm:$0x3] }
 0x64b   :  { %v2019_v37 = vld [vmem:[#allocation2 + $0xa] sm:$0x3]  ;;  %2722 = vmatprep.subr.bf16.mxu1 %v2912_v0 }
 0x64c   :  { %2549 = vmatmul.mubr.msk.f32.vlgmr.msra.gmra.mrb[20].mxu0 %vm71_vm1, %v1526_v35  ;;  %v2034_v38 = vmul.f32 %v3051_v49, %v2019_v37 }
 0x64d   :  { %2718 = vmatpush3.bf16.msra.mxu0 %v2991_v12  ;;  %2570 = vmatprep.mubr.msk.f32.mxu0 %vm2913_vm0, %v2914_v1 }
 0x64e   :  { %v2052_v5 = vsel %vm317_vm2, %v2034_v38, 0.0  ;;  %2719 = vmatprep.subr.bf16.mxu0 %v2912_v0 }
 0x64f   :  { %2053 = vadd.xlane.f32.xlu1 %v2052_v5 }
 0x651   :  { %2721 = vmatpush3.bf16.msra.mxu0 %v2995_v15 }
 0x717   :  { %v1598_v39 = vpop.f32.mrb[18].mxu0  ;;  %v1668_v40 = vpop.f32.mrb[18].mxu1 }
 0x718   :  { %v1674_v41 = vadd.f32 %v1673_v11, %v1598_v39  ;;  %v2528_v43 = vpop.f32.mrb[19].mxu0  ;;  %v2539_v44 = vpop.f32.mrb[19].mxu1  ;;  %v1683_v46 = vadd.f32 %v1682_v42, %v1668_v40 }
 0x71a   :  { %v2191_v45 = vmul.f32 -1.442695, %v1674_v41  ;;  %v2192_v12 = vmul.f32 -1.442695, %v1683_v46 }
 0x71c   :  { %2798 = vpow2.f32 %v2191_v45 }
 0x71d   :  { %2800 = vpow2.f32 %v2192_v12 }
 0x71f   :  { %v1758_v47 = vpop.f32.mrb[20].mxu0 }
 0x720   :  { %v2550_v48 = vpop.f32.mrb[21].mxu0  ;;  %v1759_v15 = vadd.f32 %v3033_v36, %v1758_v47 }
 0x726   :  { %v2799_v50 = vpop.eup %2798 }
 0x727   :  { %v1678_v51 = vadd.f32 1.0, %v2799_v50  ;;  %v2801_v52 = vpop.eup %2800 }
 0x728   :  { %v1687_v53 = vadd.f32 1.0, %v2801_v52 }
 0x729   :  { %2802 = vrcp.f32 %v1678_v51 }
 0x72a   :  { %2804 = vrcp.f32 %v1687_v53 }
 0x733   :  { %v2803_v54 = vpop.eup %2802 }
 0x734   :  { %v1762_v56 = vmul.f32 %v2803_v54, %v1759_v15  ;;  %v2805_v58 = vpop.eup %2804 }
 0x735   :  { %v1765_v59 = vsub.f32 1.0, %v2805_v58  ;;  %v1767_v62 = vmul.f32 %v2805_v58, %v1526_v35 }
 0x736   :  { %v1763_v57 = vadd.f32 %v1762_v56, %v1691_v55 }
 0x738   :  { %2806 = vtanh.f32 %v1763_v57 }
 0x742   :  { %v2807_v60 = vpop.eup %2806 }
 0x743   :  { %v1766_v61 = vmul.f32 %v2807_v60, %v1765_v59 }
 0x745   :  { %v1768_v63 = vadd.f32 %v1767_v62, %v1766_v61 }
 0x747   :  { %1770 = vst.msk [vmem:[#allocation2 + $0xc] sm:$0x3] %vm317_vm2, %v1768_v63  ;;  %2560 = vmatmul.mubr.msk.f32.vlgmr.msra.gmra.mrb[20].mxu1 %vm71_vm1, %v1768_v63  ;;  %2571 = vmatmul.mubr.msk.f32.vlgmr.msra.gmra.mrb[22].mxu0 %vm71_vm1, %v1768_v63 }
 0x748   :  { %2724 = vmatpush3.bf16.msra.mxu1 %v3002_v17  ;;  %2581 = vmatprep.mubr.msk.f32.mxu1 %vm2913_vm0, %v2914_v1  ;;  %v1924_v17 = vld [vmem:[#allocation4 + $0x2c] sm:$0x3] }
 0x749   :  { %2725 = vmatprep.subr.bf16.mxu1 %v2912_v0 }
 0x74c   :  { %2727 = vmatpush3.bf16.msra.mxu1 %v3009_v20 }
 0x74e   :  { %v2020_v2 = vld [vmem:[#allocation2 + $0xc] sm:$0x3] }
 0x74f   :  { %2582 = vmatmul.mubr.msk.f32.vlgmr.msra.gmra.mrb[22].mxu1 %vm71_vm1, %v1768_v63  ;;  %v2035_v3 = vmul.f32 %v3051_v49, %v2020_v2 }
 0x751   :  { %v2055_v4 = vsel %vm317_vm2, %v2035_v3, 0.0 }
 0x752   :  { %2056 = vadd.xlane.f32.xlu0 %v2055_v4 }
 0x81a   :  { %v1840_v7 = vpop.f32.mrb[20].mxu1  ;;  %v1910_v8 = vpop.f32.mrb[22].mxu0 }
 0x81b   :  { %v1916_v9 = vadd.f32 %v1915_v6, %v1840_v7  ;;  %v2561_v10 = vpop.f32.mrb[21].mxu1  ;;  %v2572_v13 = vpop.f32.mrb[23].mxu0  ;;  %v1925_v14 = vadd.f32 %v1924_v17, %v1910_v8 }
 0x81d   :  { %v2196_v1 = vmul.f32 -1.442695, %v1916_v9  ;;  %v2197_v0 = vmul.f32 -1.442695, %v1925_v14 }
 0x81f   :  { %2808 = vpow2.f32 %v2196_v1 }
 0x820   :  { %2810 = vpow2.f32 %v2197_v0 }
 0x822   :  { %v2000_v20 = vpop.f32.mrb[22].mxu1 }
 0x823   :  { %v2583_v16 = vpop.f32.mrb[23].mxu1  ;;  %v2001_v23 = vadd.f32 %v3033_v36, %v2000_v20 }
 0x829   :  { %v2809_v18 = vpop.eup %2808 }
 0x82a   :  { %v1920_v19 = vadd.f32 1.0, %v2809_v18  ;;  %v2811_v21 = vpop.eup %2810 }
 0x82b   :  { %v1929_v22 = vadd.f32 1.0, %v2811_v21 }
 0x82c   :  { %2812 = vrcp.f32 %v1920_v19 }
 0x82d   :  { %2814 = vrcp.f32 %v1929_v22 }
 0x836   :  { %v2813_v24 = vpop.eup %2812 }
 0x837   :  { %v2004_v26 = vmul.f32 %v2813_v24, %v2001_v23  ;;  %v2815_v28 = vpop.eup %2814 }
 0x838   :  { %v2007_v29 = vsub.f32 1.0, %v2815_v28  ;;  %v2009_v31 = vmul.f32 %v2815_v28, %v1768_v63 }
 0x839   :  { %v2005_v27 = vadd.f32 %v2004_v26, %v1933_v25 }
 0x83b   :  { %2816 = vtanh.f32 %v2005_v27 }
 0x845   :  { %v2817_v30 = vpop.eup %2816 }
 0x846   :  { %v2008_v32 = vmul.f32 %v2817_v30, %v2007_v29 }
 0x848   :  { %v2010_v33 = vadd.f32 %v2009_v31, %v2008_v32 }
 0x84a   :  { %2012 = vst.msk [vmem:[#allocation2 + $0xe] sm:$0x3] %vm317_vm2, %v2010_v33  ;;  %2013 = vst.msk [vmem:[#allocation9] sm:$0x3] %vm317_vm2, %v2010_v33 }
 0x851   :  { %v2021_v34 = vld [vmem:[#allocation2 + $0xe] sm:$0x3] }
 0x852   :  { %v2036_v35 = vmul.f32 %v3051_v49, %v2021_v34 }
 0x854   :  { %v2058_v36 = vsel %vm317_vm2, %v2036_v35, 0.0 }
 0x855   :  { %2059 = vadd.xlane.f32.xlu1 %v2058_v36 }
 0x856   :  { %2889 = shalt.err (!%p2886_p6)
}
 0x857   :  { %s2890_s12 = scalar_lea.hbm %s3231_s7, 32 }
 0x858   :  { %p2891_p7 = scmp.ne.s32.totalorder %s3231_s7, %s2890_s12  ;;  %p2894_p8 = scmp.lt.u32.totalorder %s2890_s12, %s3231_s7 }
 0x85a   :  { %p2896_p9 = pnand %p2894_p8, %p2891_p7 }
 0x85c   :  { %2899 = shalt.err (!%p2896_p9)
}
 0x85d   :  { %2149 = dma.vmem_to_hbm [thread:$0]  %s2147_s8, 32, %s3231_s7, [#allocation6]   ;;  %v2039_v49 = vpop.xlane.xlu0 %2038  ;;  %v2045_v37 = vpop.xlane.xlu1 %2044  ;;  %v2062_v5 = vstv %s3229_s5  ;;  %v2087_v48 = vlaneseq  ;;  %vm2121_vm3 = vcmask 1041409   ;;  %vm2123_vm4 = vcmask 1042434  }
 0x85e   :  { %v2063_v40 = vadd.f32 %v2062_v5, %v2039_v49  ;;  %v2065_v42 = vadd.f32 %v2062_v5, %v2045_v37  ;;  %vm2125_vm5 = vcmask 1043459   ;;  %vm2127_vm6 = vcmask 1044484  }
 0x85f   :  { %v2088_v50 = vand.u32 127, %v2087_v48  ;;  %v2090_v51 = vshrl.u32 %v2087_v48, 7  ;;  %vm2129_vm7 = vcmask 1045509   ;;  %vm2131_vm8 = vcmask 1046534  }
 0x860   :  { %2818 = vtanh.f32 %v2063_v40  ;;  %vm2133_vm9 = vcmask 1047559   ;;  %vm2136_vm10 = vcmask 15360  }
 0x861   :  { %v2042_v38 = vpop.xlane.xlu0 %2041  ;;  %v2048_v11 = vpop.xlane.xlu1 %2047  ;;  %v2091_v56 = vsub.s32 %v2088_v50, %v2090_v51 }
 0x862   :  { %v2064_v41 = vadd.f32 %v2062_v5, %v2042_v38  ;;  %v2066_v44 = vadd.f32 %v2062_v5, %v2048_v11 }
 0x864   :  { %2820 = vtanh.f32 %v2064_v41 }
 0x865   :  { %v2051_v39 = vpop.xlane.xlu0 %2050  ;;  %v2054_v43 = vpop.xlane.xlu1 %2053  ;;  %2822 = vtanh.f32 %v2065_v42 }
 0x866   :  { %v2067_v46 = vadd.f32 %v2062_v5, %v2051_v39  ;;  %v2068_v12 = vadd.f32 %v2062_v5, %v2054_v43  ;;  %2824 = vtanh.f32 %v2066_v44 }
 0x868   :  { %2826 = vtanh.f32 %v2067_v46 }
 0x869   :  { %v2057_v45 = vpop.xlane.xlu0 %2056  ;;  %2828 = vtanh.f32 %v2068_v12 }
 0x86a   :  { %v2069_v47 = vadd.f32 %v2062_v5, %v2057_v45  ;;  %v2819_v15 = vpop.eup %2818 }
 0x86b   :  { %v2092_v63 = vrot.slane %v2819_v15, %v2091_v56 }
 0x86c   :  { %2830 = vtanh.f32 %v2069_v47 }
 0x86e   :  { %v2821_v54 = vpop.eup %2820 }
 0x86f   :  { %v2823_v55 = vpop.eup %2822  ;;  %v2096_v59 = vrot.slane %v2821_v54, %v2091_v56 }
 0x870   :  { %v2825_v57 = vpop.eup %2824  ;;  %v2100_v61 = vrot.slane %v2823_v55, %v2091_v56 }
 0x871   :  { %v2104_v2 = vrot.slane %v2825_v57, %v2091_v56  ;;  %v2122_v4 = vsel %vm2121_vm3, %v2096_v59, %v2092_v63 }
 0x872   :  { %v2827_v58 = vpop.eup %2826  ;;  %v2124_v7 = vsel %vm2123_vm4, %v2100_v61, %v2122_v4 }
 0x873   :  { %v2829_v60 = vpop.eup %2828  ;;  %v2108_v3 = vrot.slane %v2827_v58, %v2091_v56  ;;  %v2126_v9 = vsel %vm2125_vm5, %v2104_v2, %v2124_v7 }
 0x874   :  { %v2112_v6 = vrot.slane %v2829_v60, %v2091_v56 }
 0x875   :  { %v2128_v10 = vsel %vm2127_vm6, %v2108_v3, %v2126_v9 }
 0x876   :  { %v2831_v62 = vpop.eup %2830  ;;  %v2130_v13 = vsel %vm2129_vm7, %v2112_v6, %v2128_v10 }
 0x877   :  { %v2116_v8 = vrot.slane %v2831_v62, %v2091_v56 }
 0x879   :  { %v2132_v14 = vsel %vm2131_vm8, %v2116_v8, %v2130_v13 }
 0x8e2   :  { %v2060_v52 = vpop.xlane.xlu1 %2059 }
 0x8e3   :  { %v2070_v53 = vadd.f32 %v2062_v5, %v2060_v52 }
 0x8e5   :  { %2832 = vtanh.f32 %v2070_v53 }
 0x8ef   :  { %v2833_v17 = vpop.eup %2832 }
 0x8f0   :  { %v2120_v1 = vrot.slane %v2833_v17, %v2091_v56 }
 0x8f2   :  { %v2134_v0 = vsel %vm2133_vm9, %v2120_v1, %v2132_v14 }
 0x8f3   :  { %2137 = vst.msk [vmem:[%s3230_s6] sm:$0xff] %vm2136_vm10, %v2134_v0 }
 0x8f4   :  { %2904 = dma.done.wait [#allocation6], 32  }
 0x8f5   :  { %2905 = vsyncadd [#allocation6], 4294967264 }
 0x8f6   :  { %2155 = vsyncpa [#allocation5], 1 }
 0x8f7   :  { %2156 = vsyncpa [#allocation8], 1 }
 0x8f8   :  { %2157 = vsyncpa [#allocation6], 1 }

</bundles_post_ra>
